<compile_context>
chip_gen: v7x
topology: tpu7x:2x2x1
jax: 0.10.0
libtpu: 0.0.40
codegen_flags: <defaults>
</compile_context>

<pallas_src>
import functools

import jax
import jax.numpy as jnp
from jax.experimental import pallas as pl
from jax.experimental.pallas import tpu as pltpu


LANE = 128


def _round_up(x, m):
    return ((x + m - 1) // m) * m


def _pick_row_tile(n_pad, cap=1024):
    """Largest multiple of 128 that divides n_pad and is <= cap."""
    best = 128
    t = 128
    while t <= min(n_pad, cap):
        if n_pad % t == 0:
            best = t
        t += 128
    return best


# ----------------------------------------------------------------------------
# Pallas kernels
# ----------------------------------------------------------------------------
def gcn_fullk_kernel(n_valid, a_ref, xw_ref, b_ref, z_ref, sum_ref):
    """z = relu(A_hat_row_strip @ XW + b); full reduction in one dot.

    a_ref   (1, tm, N_pad)   bf16   row strip of the group's adjacency
    xw_ref  (1, N_pad, 2*H)  bf16   resident [XW | XW[perm]] for this group
    b_ref   (1, 1, 2*H)      f32    bias tiled twice along lanes
    z_ref   (1, tm, 2*H)     f32
    sum_ref (1, 1, H)        f32    node-sum of first H lanes (z1/z2 only)
    """
    i = pl.program_id(1)
    tm = a_ref.shape[1]

    z = jnp.dot(a_ref[0], xw_ref[0], preferred_element_type=jnp.float32)
    z = jnp.maximum(z + b_ref[0], 0.0)
    # zero padded node rows so z writeback and the node-sum stay exact
    row = i * tm + jax.lax.broadcasted_iota(jnp.int32, z.shape, 0)
    z = jnp.where(row < n_valid, z, 0.0)
    z_ref[0] = z.astype(z_ref.dtype)

    @pl.when(i == 0)
    def _():
        sum_ref[...] = jnp.zeros_like(sum_ref)
    # only the clean half (first H_pad lanes) feeds the projection
    h_sum = sum_ref.shape[-1]
    sum_ref[0] += jnp.sum(z[:, :h_sum], axis=0, keepdims=True)


def gcn_ktiled_kernel(n_valid, a_ref, xw_ref, b_ref, z_ref, sum_ref, acc_ref):
    """Large-graph fallback: reduction tiled over k with an f32 accumulator."""
    i = pl.program_id(1)
    k = pl.program_id(2)
    tm = acc_ref.shape[0]

    @pl.when(k == 0)
    def _():
        acc_ref[...] = jnp.zeros_like(acc_ref)

    @pl.when((i == 0) & (k == 0))
    def _():
        sum_ref[...] = jnp.zeros_like(sum_ref)

    acc_ref[...] += jnp.dot(a_ref[0], xw_ref[0],
                            preferred_element_type=jnp.float32)

    @pl.when(k == pl.num_programs(2) - 1)
    def _():
        z = jnp.maximum(acc_ref[...] + b_ref[0], 0.0)
        row = i * tm + jax.lax.broadcasted_iota(jnp.int32, z.shape, 0)
        z = jnp.where(row < n_valid, z, 0.0)
        z_ref[0] = z.astype(z_ref.dtype)
        h_sum = sum_ref.shape[-1]
        sum_ref[0] += jnp.sum(z[:, :h_sum], axis=0, keepdims=True)


# ----------------------------------------------------------------------------
# pallas_call plumbing
# ----------------------------------------------------------------------------
def gcn_aggregate(a_stack, xw_grp, b_grp, n_valid, h_sum, *, force_ktiled=False):
    """Batched z = relu(A_hat @ [XW | XW_perm] + [b|b]) over 2 adjacency groups.

    a_stack [2, N_pad, N_pad]   bf16
    xw_grp  [2, N_pad, 2*H_pad] bf16
    b_grp   [2, 1, 2*H_pad]     f32
    Returns (z [2, N_pad, 2*H_pad] f32, node_sums [2, 1, H_pad] f32).
    """
    nb, n_pad, _ = a_stack.shape
    wout = xw_grp.shape[2]

    cost = pl.CostEstimate(
        flops=2 * nb * n_pad * n_pad * wout,
        transcendentals=0,
        bytes_accessed=(nb * n_pad * n_pad * 2        # A_hat (bf16, streamed once)
                        + nb * n_pad * wout * 2       # XW (bf16)
                        + nb * n_pad * wout * 4),     # z writeback (f32)
    )
    out_shape = (
        jax.ShapeDtypeStruct((nb, n_pad, wout), jnp.float32),
        jax.ShapeDtypeStruct((nb, 1, h_sum), jnp.float32),
    )
    cparams = pltpu.CompilerParams(vmem_limit_bytes=32 * 1024 * 1024)

    # VMEM working-set estimate for the full-K row-strip path (double buffers).
    tm_full = _pick_row_tile(n_pad, cap=1024)
    fullk_bytes = (2 * tm_full * n_pad * 2      # A row strip, bf16
                   + 2 * n_pad * wout * 2       # resident XW, bf16
                   + 2 * tm_full * wout * 4     # z output tile, f32
                   + 8 * wout + 8 * h_sum)
    use_fullk = (not force_ktiled) and fullk_bytes <= 24 * 1024 * 1024

    if use_fullk:
        tm = tm_full
        kernel = functools.partial(gcn_fullk_kernel, n_valid)
        return pl.pallas_call(
            kernel,
            out_shape=out_shape,
            grid=(nb, n_pad // tm),
            in_specs=[
                pl.BlockSpec((1, tm, n_pad), lambda g, i: (g, i, 0)),
                pl.BlockSpec((1, n_pad, wout), lambda g, i: (g, 0, 0)),
                pl.BlockSpec((1, 1, wout), lambda g, i: (g, 0, 0)),
            ],
            out_specs=(
                pl.BlockSpec((1, tm, wout), lambda g, i: (g, i, 0)),
                pl.BlockSpec((1, 1, h_sum), lambda g, i: (g, 0, 0)),
            ),
            compiler_params=pltpu.CompilerParams(
                # i must stay "arbitrary": the node-sum block is shared across i.
                dimension_semantics=("parallel", "arbitrary"),
                vmem_limit_bytes=32 * 1024 * 1024,
            ),
            cost_estimate=cost,
        )(a_stack, xw_grp, b_grp)

    # Fallback: tile the reduction axis with an f32 accumulator scratch.
    tile = _pick_row_tile(n_pad, cap=(128 if force_ktiled else 512))
    tm = tk = tile
    kernel = functools.partial(gcn_ktiled_kernel, n_valid)
    return pl.pallas_call(
        kernel,
        out_shape=out_shape,
        grid=(nb, n_pad // tm, n_pad // tk),
        in_specs=[
            pl.BlockSpec((1, tm, tk), lambda g, i, k: (g, i, k)),
            pl.BlockSpec((1, tk, wout), lambda g, i, k: (g, k, 0)),
            pl.BlockSpec((1, 1, wout), lambda g, i, k: (g, 0, 0)),
        ],
        out_specs=(
            pl.BlockSpec((1, tm, wout), lambda g, i, k: (g, i, 0)),
            pl.BlockSpec((1, 1, h_sum), lambda g, i, k: (g, 0, 0)),
        ),
        scratch_shapes=[pltpu.VMEM((tm, wout), jnp.float32)],
        compiler_params=pltpu.CompilerParams(
            dimension_semantics=("parallel", "arbitrary", "arbitrary"),
            vmem_limit_bytes=32 * 1024 * 1024,
        ),
        cost_estimate=cost,
    )(a_stack, xw_grp, b_grp)


# ----------------------------------------------------------------------------
# Glue: graph preprocessing, augmentation, corruption, full forward
# ----------------------------------------------------------------------------
def build_norm_adj(edge_index, n):
    """Dense D^-1/2 (A + I) D^-1/2 from a [2, E] edge_index (f32 throughout)."""
    a = jnp.zeros((n, n), jnp.float32)
    a = a.at[edge_index[0], edge_index[1]].set(1.0)
    a = jnp.maximum(a, a.T)                      # symmetrize
    a = a + jnp.eye(n, dtype=jnp.float32)        # self loops
    deg = a.sum(axis=1)
    dinv = jax.lax.rsqrt(deg)                    # normalization in f32
    return a * dinv[:, None] * dinv[None, :]


def identity_augment(x, edge_index, ptb_prob, batch=None):
    # TODO(synk): learned edge-perturbation augmentor not reproducible here; identity.
    del ptb_prob, batch
    return x, edge_index, None


def corruption_perms(key, n):
    k1, k2 = jax.random.split(key)
    return jax.random.permutation(k1, n), jax.random.permutation(k2, n)


def encoder_forward(params, data, corrupt_key, force_ktiled=False):
    """Mirrors Encoder.forward: returns (z1, z2, g1, g2, z1n, z2n)."""
    x, edge_index = data["x"], data["edge_index"]
    x1, ei1, _ = identity_augment(x, edge_index, data["max"])
    x2, ei2, _ = identity_augment(x, edge_index, data["min"])

    n, _ = x.shape
    h = params["w1"].shape[1]
    n_pad = _round_up(n, LANE)
    h_pad = _round_up(h, LANE)
    wout = 2 * h_pad

    # Dense normalized adjacencies.  Corruption keeps edge_index, so the
    # corrupted branches reuse the same A_hat — streamed ONCE per group.
    a1 = build_norm_adj(ei1, n)
    a2 = build_norm_adj(ei2, n)
    a_stack = jnp.zeros((2, n_pad, n_pad), jnp.float32)
    a_stack = a_stack.at[0, :n, :n].set(a1).at[1, :n, :n].set(a2)
    a_stack = a_stack.astype(jnp.bfloat16)

    # Stage 1 (reassociated GCN): XW = X @ W in plain JAX — tiny vs the N^2*H
    # aggregation; a separate kernel launch + HBM round trip costs more.
    xw1 = x1 @ params["w1"]                              # [n, h] f32
    xw2 = x2 @ params["w2"]

    # Corrupted branch = row permutation of XW (X[perm] @ W == (X @ W)[perm]).
    perm1, perm2 = corruption_perms(corrupt_key, n)

    # Group g packs [XW_g | XW_g[perm_g]] along lanes: 256-wide MXU RHS, each
    # A_hat streamed once for both the clean and corrupted pass.
    xw_grp = jnp.zeros((2, n_pad, wout), jnp.float32)
    xw_grp = xw_grp.at[0, :n, :h].set(xw1)
    xw_grp = xw_grp.at[0, :n, h_pad:h_pad + h].set(xw1[perm1])
    xw_grp = xw_grp.at[1, :n, :h].set(xw2)
    xw_grp = xw_grp.at[1, :n, h_pad:h_pad + h].set(xw2[perm2])
    xw_grp = xw_grp.astype(jnp.bfloat16)

    b_grp = jnp.zeros((2, 1, wout), jnp.float32)
    b_grp = b_grp.at[0, :, :h].set(params["b1"])
    b_grp = b_grp.at[0, :, h_pad:h_pad + h].set(params["b1"])
    b_grp = b_grp.at[1, :, :h].set(params["b2"])
    b_grp = b_grp.at[1, :, h_pad:h_pad + h].set(params["b2"])

    # Stage 2: fused  relu(A_hat @ [XW|XW_perm] + b)  with node-sum epilogue.
    z_grp, sums = gcn_aggregate(a_stack, xw_grp, b_grp, n, h_pad,
                                force_ktiled=force_ktiled)

    # Projection of sigmoid(mean_nodes(z1/z2)) in plain JAX (a (1,H)x(H,H) op;
    # a kernel launch here is pure overhead).
    s1 = jax.nn.sigmoid(sums[0, 0, :h] / n)[None, :]
    s2 = jax.nn.sigmoid(sums[1, 0, :h] / n)[None, :]
    g1 = s1 @ params["w_proj"] + params["b_proj"]
    g2 = s2 @ params["w_proj"] + params["b_proj"]

    z1 = z_grp[0, :n, :h]
    z1n = z_grp[0, :n, h_pad:h_pad + h]
    z2 = z_grp[1, :n, :h]
    z2n = z_grp[1, :n, h_pad:h_pad + h]
    return z1, z2, g1, g2, z1n, z2n


def init_params(key, feat_dim, hidden_dim):
    ks = jax.random.split(key, 4)
    bnd_gcn = 1.0 / jnp.sqrt(feat_dim)
    bnd_h = 1.0 / jnp.sqrt(hidden_dim)   # torch_geometric `uniform(hidden, w)`
    return {
        # GCN weights stored as [F, H] (transposed torch layout) so we do x @ W
        "w1": jax.random.uniform(ks[0], (feat_dim, hidden_dim), jnp.float32,
                                 -bnd_gcn, bnd_gcn),
        "b1": jnp.zeros((1, hidden_dim), jnp.float32),
        "w2": jax.random.uniform(ks[1], (feat_dim, hidden_dim), jnp.float32,
                                 -bnd_gcn, bnd_gcn),
        "b2": jnp.zeros((1, hidden_dim), jnp.float32),
        # projection Linear: stored transposed [H_in, H_out]
        "w_proj": jax.random.uniform(ks[2], (hidden_dim, hidden_dim), jnp.float32,
                                     -bnd_h, bnd_h),
        "b_proj": jax.random.uniform(ks[3], (1, hidden_dim), jnp.float32,
                                     -bnd_h, bnd_h),
    }


def reference_forward(params, x, edge_index, corrupt_key):
    """Pure-JAX f32 reference with identical semantics (sanity check)."""
    n = x.shape[0]
    a = build_norm_adj(edge_index, n)

    def gcn(a_, x_, w, b):
        return jnp.maximum(a_ @ (x_ @ w) + b, 0.0)

    def proj(z):
        s = jax.nn.sigmoid(jnp.mean(z, axis=0, keepdims=True))
        return s @ params["w_proj"] + params["b_proj"]

    z1 = gcn(a, x, params["w1"], params["b1"])
    z2 = gcn(a, x, params["w2"], params["b2"])
    g1, g2 = proj(z1), proj(z2)
    perm1, perm2 = corruption_perms(corrupt_key, n)
    z1n = gcn(a, x[perm1], params["w1"], params["b1"])
    z2n = gcn(a, x[perm2], params["w2"], params["b2"])
    return z1, z2, g1, g2, z1n, z2n


if __name__ == "__main__":
    key = jax.random.PRNGKey(0)
    k_x, k_p, k_c = jax.random.split(key, 3)

    # nodes / in-features / hidden (logical sizes; padded to 128 lanes inside)
    N, F, H = 384, 64, 32

    x = jax.random.normal(k_x, (N, F), jnp.float32)
    # deterministic graph: ring edges plus +5 chords
    nodes = jnp.arange(N, dtype=jnp.int32)
    src = jnp.concatenate([nodes, nodes])
    dst = jnp.concatenate([(nodes + 1) % N, (nodes + 5) % N])
    edge_index = jnp.stack([src, dst])           # [2, E]
    E = src.shape[0]

    data = {
        "x": x,
        "edge_index": edge_index,
        "max": jnp.full((E,), 0.9, jnp.float32),   # ptb_prob1 (unused, identity aug)
        "min": jnp.full((E,), 0.1, jnp.float32),   # ptb_prob2 (unused, identity aug)
    }

    params = init_params(k_p, F, H)
    refs = reference_forward(params, x, edge_index, k_c)

    # Primary path: full-K kernel (no reduction axis, no accumulator scratch).
    fwd = jax.jit(functools.partial(encoder_forward, force_ktiled=False))
    outs = jax.block_until_ready(fwd(params, data, k_c))
    z1, z2, g1, g2, z1n, z2n = outs

    assert z1.shape == (N, H) and z2.shape == (N, H)
    assert g1.shape == (1, H) and g2.shape == (1, H)
    assert z1n.shape == (N, H) and z2n.shape == (N, H)
    assert all(bool(jnp.all(jnp.isfinite(o))) for o in outs)

    # Loose check vs f32 reference (bf16 MXU inputs, f32 accumulation).
    for got, want in zip(outs, refs):
        err = float(jnp.max(jnp.abs(got - want)))
        assert jnp.allclose(got, want, rtol=5e-2, atol=5e-2), err

    # Also exercise the large-graph k-tiled accumulator fallback once.
    fwd_tiled = jax.jit(functools.partial(encoder_forward, force_ktiled=True))
    outs_t = jax.block_until_ready(fwd_tiled(params, data, k_c))
    for got, want in zip(outs_t, refs):
        err = float(jnp.max(jnp.abs(got - want)))
        assert jnp.allclose(got, want, rtol=5e-2, atol=5e-2), err

    print("KERNEL_OK")
</pallas_src>

<mosaic_0001>
module attributes {stable_mosaic.version = 11 : i64} {
  func.func @gcn_fullk_kernel(%arg0: i32, %arg1: i32, %arg2: memref<1x384x384xbf16, #tpu.memory_space<vmem>>, %arg3: memref<1x384x256xbf16, #tpu.memory_space<vmem>>, %arg4: memref<1x1x256xf32, #tpu.memory_space<vmem>>, %arg5: memref<1x384x256xf32, #tpu.memory_space<vmem>>, %arg6: memref<1x1x128xf32, #tpu.memory_space<vmem>>) attributes {dimension_semantics = [#tpu.dimension_semantics<parallel>, #tpu.dimension_semantics<arbitrary>], iteration_bounds = array<i64: 2, 1>, scalar_prefetch = 0 : i64, scratch_operands = 0 : i64, tpu.core_type = #tpu.core_type<tc>, window_params = [{transform_indices = @transform_0, window_bounds = array<i64: 1, 384, 384>}, {transform_indices = @transform_1, window_bounds = array<i64: 1, 384, 256>}, {transform_indices = @transform_2, window_bounds = array<i64: 1, 1, 256>}, {transform_indices = @transform_3, window_bounds = array<i64: 1, 384, 256>}, {transform_indices = @transform_4, window_bounds = array<i64: 1, 1, 128>}]} {
    %c0 = arith.constant 0 : index
    %c0_0 = arith.constant 0 : index
    %c0_1 = arith.constant 0 : index
    %0 = vector.load %arg2[%c0, %c0_0, %c0_1] : memref<1x384x384xbf16, #tpu.memory_space<vmem>>, vector<1x384x384xbf16>
    %1 = vector.shape_cast %0 : vector<1x384x384xbf16> to vector<384x384xbf16>
    %c0_2 = arith.constant 0 : index
    %c0_3 = arith.constant 0 : index
    %c0_4 = arith.constant 0 : index
    %2 = vector.load %arg3[%c0_2, %c0_3, %c0_4] : memref<1x384x256xbf16, #tpu.memory_space<vmem>>, vector<1x384x256xbf16>
    %3 = vector.shape_cast %2 : vector<1x384x256xbf16> to vector<384x256xbf16>
    %cst = arith.constant dense<0.000000e+00> : vector<384x256xf32>
    %4 = tpu.matmul %1, %3, %cst {dimension_numbers = #tpu.dot_dimension_numbers<[1], [0], [0], [1], [0, 0, 1, 1], [], []>} : vector<384x384xbf16>, vector<384x256xbf16>, vector<384x256xf32> -> vector<384x256xf32>
    %c0_5 = arith.constant 0 : index
    %c0_6 = arith.constant 0 : index
    %c0_7 = arith.constant 0 : index
    %5 = vector.load %arg4[%c0_5, %c0_6, %c0_7] : memref<1x1x256xf32, #tpu.memory_space<vmem>>, vector<1x1x256xf32>
    %6 = vector.shape_cast %5 : vector<1x1x256xf32> to vector<1x256xf32>
    %7 = vector.broadcast %6 : vector<1x256xf32> to vector<384x256xf32>
    %8 = arith.addf %4, %7 : vector<384x256xf32>
    %cst_8 = arith.constant 0.000000e+00 : f32
    %9 = vector.broadcast %cst_8 : f32 to vector<384x256xf32>
    %10 = arith.maximumf %8, %9 : vector<384x256xf32>
    %c384_i32 = arith.constant 384 : i32
    %11 = arith.muli %arg1, %c384_i32 : i32
    %12 = tpu.iota {dimensions = array<i32: 0>} : vector<384x256xi32>
    %13 = vector.broadcast %11 : i32 to vector<384x256xi32>
    %14 = arith.addi %13, %12 : vector<384x256xi32>
    %c384_i32_9 = arith.constant 384 : i32
    %15 = vector.broadcast %c384_i32_9 : i32 to vector<384x256xi32>
    %16 = arith.cmpi slt, %14, %15 : vector<384x256xi32>
    %cst_10 = arith.constant 0.000000e+00 : f32
    %17 = vector.broadcast %cst_10 : f32 to vector<384x256xf32>
    %18 = arith.select %16, %10, %17 : vector<384x256xi1>, vector<384x256xf32>
    %c0_11 = arith.constant 0 : index
    %c0_12 = arith.constant 0 : index
    %c0_13 = arith.constant 0 : index
    %19 = vector.load %arg5[%c0_11, %c0_12, %c0_13] : memref<1x384x256xf32, #tpu.memory_space<vmem>>, vector<1x384x256xf32>
    %20 = vector.shape_cast %19 : vector<1x384x256xf32> to vector<384x256xf32>
    %21 = vector.shape_cast %18 : vector<384x256xf32> to vector<1x384x256xf32>
    tpu.vector_store %arg5[%c0_11, %c0_12, %c0_13], %21 {strides = array<i32>} : memref<1x384x256xf32, #tpu.memory_space<vmem>>, vector<1x384x256xf32>,
    %c0_i32 = arith.constant 0 : i32
    %22 = arith.cmpi eq, %arg1, %c0_i32 : i32
    %23 = arith.extui %22 : i1 to i32
    %c0_i32_14 = arith.constant 0 : i32
    %24 = arith.cmpi ne, %23, %c0_i32_14 : i32
    scf.if %24 {
      %cst_22 = arith.constant 0.000000e+00 : f32
      %34 = vector.broadcast %cst_22 : f32 to vector<1x1x128xf32>
      %c0_23 = arith.constant 0 : index
      %c0_24 = arith.constant 0 : index
      %c0_25 = arith.constant 0 : index
      %35 = vector.load %arg6[%c0_23, %c0_24, %c0_25] : memref<1x1x128xf32, #tpu.memory_space<vmem>>, vector<1x1x128xf32>
      tpu.vector_store %arg6[%c0_23, %c0_24, %c0_25], %34 {strides = array<i32>} : memref<1x1x128xf32, #tpu.memory_space<vmem>>, vector<1x1x128xf32>,
    } else {
    }
    %c0_15 = arith.constant 0 : index
    %c0_16 = arith.constant 0 : index
    %c0_17 = arith.constant 0 : index
    %25 = vector.load %arg6[%c0_15, %c0_16, %c0_17] : memref<1x1x128xf32, #tpu.memory_space<vmem>>, vector<1x1x128xf32>
    %26 = vector.shape_cast %25 : vector<1x1x128xf32> to vector<1x128xf32>
    %27 = vector.extract_strided_slice %18 {offsets = [0, 0], sizes = [384, 128], strides = [1, 1]} : vector<384x256xf32> to vector<384x128xf32>
    %cst_18 = arith.constant dense<0.000000e+00> : vector<128xf32>
    %28 = vector.multi_reduction <add>, %27, %cst_18 [0] : vector<384x128xf32> to vector<128xf32>
    %29 = vector.shape_cast %28 : vector<128xf32> to vector<1x128xf32>
    %30 = arith.addf %26, %29 : vector<1x128xf32>
    %c0_19 = arith.constant 0 : index
    %c0_20 = arith.constant 0 : index
    %c0_21 = arith.constant 0 : index
    %31 = vector.load %arg6[%c0_19, %c0_20, %c0_21] : memref<1x1x128xf32, #tpu.memory_space<vmem>>, vector<1x1x128xf32>
    %32 = vector.shape_cast %31 : vector<1x1x128xf32> to vector<1x128xf32>
    %33 = vector.shape_cast %30 : vector<1x128xf32> to vector<1x1x128xf32>
    tpu.vector_store %arg6[%c0_19, %c0_20, %c0_21], %33 {strides = array<i32>} : memref<1x1x128xf32, #tpu.memory_space<vmem>>, vector<1x1x128xf32>,
    return
  }
  func.func @transform_0(%arg0: i32, %arg1: i32) -> (i32, i32, i32) {
    %c0_i32 = arith.constant 0 : i32
    %c0_i32_0 = arith.constant 0 : i32
    return %arg0, %arg1, %c0_i32 : i32, i32, i32
  }
  func.func @transform_1(%arg0: i32, %arg1: i32) -> (i32, i32, i32) {
    %c0_i32 = arith.constant 0 : i32
    %c0_i32_0 = arith.constant 0 : i32
    %c0_i32_1 = arith.constant 0 : i32
    return %arg0, %c0_i32, %c0_i32_0 : i32, i32, i32
  }
  func.func @transform_2(%arg0: i32, %arg1: i32) -> (i32, i32, i32) {
    %c0_i32 = arith.constant 0 : i32
    %c0_i32_0 = arith.constant 0 : i32
    %c0_i32_1 = arith.constant 0 : i32
    return %arg0, %c0_i32, %c0_i32_0 : i32, i32, i32
  }
  func.func @transform_3(%arg0: i32, %arg1: i32) -> (i32, i32, i32) {
    %c0_i32 = arith.constant 0 : i32
    %c0_i32_0 = arith.constant 0 : i32
    return %arg0, %arg1, %c0_i32 : i32, i32, i32
  }
  func.func @transform_4(%arg0: i32, %arg1: i32) -> (i32, i32, i32) {
    %c0_i32 = arith.constant 0 : i32
    %c0_i32_0 = arith.constant 0 : i32
    %c0_i32_1 = arith.constant 0 : i32
    return %arg0, %c0_i32, %c0_i32_0 : i32, i32, i32
  }
}

</mosaic_0001>

<bundles_post_ra>
// kernel: encoder_forward.1
= control target key start
LH: loop header
LB: loop body
LE: loop exit
PB: predicated region body
PF: predicated region fallthrough
CT: control target
= control target key end

     0   :  { %s2827_s15 = smov 0   ;;  %s2829_s16 = smov 0   ;;  %s3491_s0 = inlined_call_operand.vmem [shape: bf16[2,384,384], index: 0, kind: input, shape index: {}]   ;;  %s3492_s1 = inlined_call_operand.vmem [shape: bf16[2,384,256], index: 1, kind: input, shape index: {}]   ;;  %s3493_s2 = inlined_call_operand.vmem [shape: f32[2,1,256], index: 2, kind: input, shape index: {}]   ;;  %s3494_s3 = inlined_call_operand.vmem [shape: f32[2,384,256], index: 3, kind: output, shape index: {0}]   ;;  %s3495_s4 = inlined_call_operand.vmem [shape: f32[2,1,128], index: 4, kind: output, shape index: {1}]  }
   0x1   :  { %s2831_s17 = smov 0  }
   0x2 LB: > { %s27_s18 = sadd.s32 1, %s2794_s16  ;;  %p2260_p0 = scmp.ge.s32.totalorder %s2798_s17, 1  ;;  %s2798_s17 = sphi %s2831_s17, %s15_s17   ;;  %s2794_s16 = sphi %s2829_s16, %s3497_s16   ;;  %s2790_s15 = sphi %s2827_s15, %s3496_s15  }
   0x3   : > { %p29_p1 = scmp.ge.s32.totalorder %s27_s18, 2  ;;  %p206_p2 = scmp.lt.s32.totalorder %s2798_s17, 3 }
   0x5   : > { %s3499_s18 = smov (%p29_p1, %s27_s18), 0  ;;  %p207_p3 = pnand %p2260_p0, %p206_p2 }
   0x6   : > { %p255_p4 = scmp.lt.s32.totalorder (!%p207_p3), %s2790_s15, 1  ;;  %v2800_v0 = vmov (!%p207_p3), 0  }
   0x7   : > { %210 = sbr.rel (%p207_p3) target bundleno = 504 (0x1f8), region = 32  ;;  %1374 = vmatprep.mubr.bf16.mxu0 (!%p207_p3), %v2800_v0 }
   0xe   : > { %s3501_s15 = smov (!%p255_p4, %s2790_s15), 1 }
   0xf   : > { %s2580_s19 = smul.u32 384, %s3501_s15  ;;  %s2263_s27 = sshll.u32 %s3501_s15, 1 }
  0x10   : > { %s2579_s23 = smul.u32 576, %s3501_s15  ;;  %s273_s30 = scalar_lea.vmem %s3493_s2, %s2263_s27 }
  0x11   : > { %s2852_s22 = scalar_lea.vmem %s3492_s1, %s2580_s19  ;;  %s2581_s5 = smul.u32 768, %s3501_s15 }
  0x12   : > { %v2608_v1 = vld [vmem:[%s2852_s22 + $0x4] ss:$8 sps:$4 sm:$0xff]   ;;  %v2610_v2 = vld [vmem:[%s2852_s22] ss:$8 sps:$4 sm:$0xff]   ;;  %v2611_v3 = vld [vmem:[%s2852_s22 + $0x14] ss:$8 sps:$4 sm:$0xff]   ;;  %s2887_s26 = scalar_lea.vmem %s3491_s0, %s2579_s23  ;;  %s3179_s11 = scalar_lea.vmem %s3495_s4, %s3501_s15 }
  0x13   : > { %1069 = vmatprep.subr.bf16.mxu1 %v2608_v1  ;;  %v2613_v4 = vld [vmem:[%s2852_s22 + $0x10] ss:$8 sps:$4 sm:$0xff]   ;;  %v2614_v5 = vld [vmem:[%s2852_s22 + $0x24] ss:$8 sps:$4 sm:$0xff]   ;;  %v2616_v6 = vld [vmem:[%s2852_s22 + $0x20] ss:$8 sps:$4 sm:$0xff]   ;;  %s3028_s8 = scalar_lea.vmem %s3494_s3, %s2581_s5 }
  0x14   : > { %1070 = vmatpush1.bf16.msra.mxu1 %v2610_v2  ;;  %v2617_v7 = vld [vmem:[%s2852_s22 + $0x34] ss:$8 sps:$4 sm:$0xff]   ;;  %v2619_v8 = vld [vmem:[%s2852_s22 + $0x30] ss:$8 sps:$4 sm:$0xff]   ;;  %v2632_v9 = vld [vmem:[%s2852_s22 + $0x104] ss:$8 sps:$4 sm:$0xff]  }
  0x15   : > { %1071 = vmatprep.subr.bf16.mxu1 %v2611_v3  ;;  %v2620_v10 = vld [vmem:[%s2852_s22 + $0x44] ss:$8 sps:$4 sm:$0xff]   ;;  %v2636_v11 = vld [vmem:[%s2852_s22 + $0x100] ss:$8 sps:$4 sm:$0xff]   ;;  %1342 = vmatprep.subr.bf16.mxu0 %v2632_v9  ;;  %v2638_v12 = vld [vmem:[%s2852_s22 + $0x114] ss:$8 sps:$4 sm:$0xff]  }
  0x16   : > { %1343 = vmatpush1.bf16.msra.mxu0 %v2636_v11  ;;  %v2622_v13 = vld [vmem:[%s2852_s22 + $0x40] ss:$8 sps:$4 sm:$0xff]   ;;  %v2623_v14 = vld [vmem:[%s2852_s22 + $0x54] ss:$8 sps:$4 sm:$0xff]   ;;  %v2642_v15 = vld [vmem:[%s2852_s22 + $0x110] ss:$8 sps:$4 sm:$0xff]  }
  0x17   : > { %1344 = vmatprep.subr.bf16.mxu0 %v2638_v12  ;;  %v2644_v16 = vld [vmem:[%s2852_s22 + $0x124] ss:$8 sps:$4 sm:$0xff]   ;;  %v2625_v17 = vld [vmem:[%s2852_s22 + $0x50] ss:$8 sps:$4 sm:$0xff]   ;;  %v2648_v18 = vld [vmem:[%s2852_s22 + $0x120] ss:$8 sps:$4 sm:$0xff]  }
  0x18   : > { %1072 = vmatpush1.bf16.msra.mxu1 %v2613_v4  ;;  %v2650_v19 = vld [vmem:[%s2852_s22 + $0x134] ss:$8 sps:$4 sm:$0xff]   ;;  %v2626_v20 = vld [vmem:[%s2852_s22 + $0x64] ss:$8 sps:$4 sm:$0xff]   ;;  %v2654_v21 = vld [vmem:[%s2852_s22 + $0x130] ss:$8 sps:$4 sm:$0xff]  }
  0x19   : > { %1073 = vmatprep.subr.bf16.mxu1 %v2614_v5  ;;  %v2628_v22 = vld [vmem:[%s2852_s22 + $0x60] ss:$8 sps:$4 sm:$0xff]   ;;  %v2656_v23 = vld [vmem:[%s2852_s22 + $0x144] ss:$8 sps:$4 sm:$0xff]   ;;  %v2629_v24 = vld [vmem:[%s2852_s22 + $0x74] ss:$8 sps:$4 sm:$0xff]  }
  0x1a   : > { %1345 = vmatpush1.bf16.msra.mxu0 %v2642_v15  ;;  %v2631_v25 = vld [vmem:[%s2852_s22 + $0x70] ss:$8 sps:$4 sm:$0xff]   ;;  %v2660_v26 = vld [vmem:[%s2852_s22 + $0x140] ss:$8 sps:$4 sm:$0xff]   ;;  %v2662_v27 = vld [vmem:[%s2852_s22 + $0x154] ss:$8 sps:$4 sm:$0xff]  }
  0x1b   : > { %1346 = vmatprep.subr.bf16.mxu0 %v2644_v16  ;;  %v2634_v28 = vld [vmem:[%s2852_s22 + $0x84] ss:$8 sps:$4 sm:$0xff]   ;;  %v2666_v29 = vld [vmem:[%s2852_s22 + $0x150] ss:$8 sps:$4 sm:$0xff]   ;;  %v2637_v30 = vld [vmem:[%s2852_s22 + $0x80] ss:$8 sps:$4 sm:$0xff]  }
  0x1c   : > { %1074 = vmatpush1.bf16.msra.mxu1 %v2616_v6  ;;  %v2668_v31 = vld [vmem:[%s2852_s22 + $0x164] ss:$8 sps:$4 sm:$0xff]   ;;  %v2640_v32 = vld [vmem:[%s2852_s22 + $0x94] ss:$8 sps:$4 sm:$0xff]   ;;  %v2643_v33 = vld [vmem:[%s2852_s22 + $0x90] ss:$8 sps:$4 sm:$0xff]  }
  0x1d   : > { %1075 = vmatprep.subr.bf16.mxu1 %v2617_v7  ;;  %v2682_v34 = vld [vmem:[%s2887_s26 + $0x4] ss:$12 sps:$4 sm:$0xff]   ;;  %v2672_v35 = vld [vmem:[%s2852_s22 + $0x160] ss:$8 sps:$4 sm:$0xff]   ;;  %v2674_v36 = vld [vmem:[%s2852_s22 + $0x174] ss:$8 sps:$4 sm:$0xff]  }
  0x1e   : > { %1347 = vmatpush1.bf16.msra.mxu0 %v2648_v18  ;;  %v2646_v37 = vld [vmem:[%s2852_s22 + $0xa4] ss:$8 sps:$4 sm:$0xff]   ;;  %1101 = vmatprep.mubr.bf16.mxu1 %v2682_v34  ;;  %v2678_v38 = vld [vmem:[%s2852_s22 + $0x170] ss:$8 sps:$4 sm:$0xff]   ;;  %v2649_v39 = vld [vmem:[%s2852_s22 + $0xa0] ss:$8 sps:$4 sm:$0xff]  }
  0x1f   : > { %1348 = vmatprep.subr.bf16.mxu0 %v2650_v19  ;;  %v2652_v40 = vld [vmem:[%s2852_s22 + $0xb4] ss:$8 sps:$4 sm:$0xff]   ;;  %v2655_v42 = vld [vmem:[%s2852_s22 + $0xb0] ss:$8 sps:$4 sm:$0xff]   ;;  %v2658_v43 = vld [vmem:[%s2852_s22 + $0xc4] ss:$8 sps:$4 sm:$0xff]  }
  0x20   : > { %1076 = vmatpush1.bf16.msra.mxu1 %v2619_v8  ;;  %v2683_v41 = vld [vmem:[%s2887_s26 + $0x8] ss:$12 sps:$4 sm:$0xff]   ;;  %v2686_v46 = vld [vmem:[%s2887_s26 + $0x20] ss:$12 sps:$4 sm:$0xff]   ;;  %v2667_v47 = vld [vmem:[%s2852_s22 + $0xd0] ss:$8 sps:$4 sm:$0xff]  }
  0x21   : > { %1077 = vmatprep.subr.bf16.mxu1 %v2620_v10  ;;  %v2661_v44 = vld [vmem:[%s2852_s22 + $0xc0] ss:$8 sps:$4 sm:$0xff]   ;;  %v2664_v45 = vld [vmem:[%s2852_s22 + $0xd4] ss:$8 sps:$4 sm:$0xff]   ;;  %v2670_v48 = vld [vmem:[%s2852_s22 + $0xe4] ss:$8 sps:$4 sm:$0xff]  }
  0x22   : > { %1349 = vmatpush1.bf16.msra.mxu0 %v2654_v21  ;;  %v2673_v49 = vld [vmem:[%s2852_s22 + $0xe0] ss:$8 sps:$4 sm:$0xff]   ;;  %v2676_v50 = vld [vmem:[%s2852_s22 + $0xf4] ss:$8 sps:$4 sm:$0xff]   ;;  %v2690_v51 = vld [vmem:[%s2887_s26 + $0x38] ss:$12 sps:$4 sm:$0xff]  }
  0x23   : > { %1350 = vmatprep.subr.bf16.mxu0 %v2656_v23  ;;  %v2679_v52 = vld [vmem:[%s2852_s22 + $0xf0] ss:$8 sps:$4 sm:$0xff]   ;;  %v2680_v53 = vld [vmem:[%s2887_s26] ss:$12 sps:$4 sm:$0xff]   ;;  %v2684_v54 = vld [vmem:[%s2887_s26 + $0x1c] ss:$12 sps:$4 sm:$0xff]  }
  0x24   : > { %1078 = vmatpush1.bf16.msra.mxu1 %v2622_v13  ;;  %v2694_v55 = vld [vmem:[%s2887_s26 + $0x50] ss:$12 sps:$4 sm:$0xff]   ;;  %v2687_v56 = vld [vmem:[%s2887_s26 + $0x18] ss:$12 sps:$4 sm:$0xff]   ;;  %v2688_v57 = vld [vmem:[%s2887_s26 + $0x34] ss:$12 sps:$4 sm:$0xff]  }
  0x25   : > { %1079 = vmatprep.subr.bf16.mxu1 %v2623_v14  ;;  %v2698_v58 = vld [vmem:[%s2887_s26 + $0x68] ss:$12 sps:$4 sm:$0xff]   ;;  %v2691_v59 = vld [vmem:[%s2887_s26 + $0x30] ss:$12 sps:$4 sm:$0xff]   ;;  %v2692_v60 = vld [vmem:[%s2887_s26 + $0x4c] ss:$12 sps:$4 sm:$0xff]  }
  0x26   : > { %1351 = vmatpush1.bf16.msra.mxu0 %v2660_v26  ;;  %v2702_v61 = vld [vmem:[%s2887_s26 + $0x80] ss:$12 sps:$4 sm:$0xff]   ;;  %v2695_v62 = vld [vmem:[%s2887_s26 + $0x48] ss:$12 sps:$4 sm:$0xff]   ;;  %v2696_v63 = vld [vmem:[%s2887_s26 + $0x64] ss:$12 sps:$4 sm:$0xff]  }
  0x27   : > { %1352 = vmatprep.subr.bf16.mxu0 %v2662_v27  ;;  %v2706_v1 = vld [vmem:[%s2887_s26 + $0x98] ss:$12 sps:$4 sm:$0xff]   ;;  %v2699_v2 = vld [vmem:[%s2887_s26 + $0x60] ss:$12 sps:$4 sm:$0xff]   ;;  %v2700_v3 = vld [vmem:[%s2887_s26 + $0x7c] ss:$12 sps:$4 sm:$0xff]  }
  0x28   : > { %1080 = vmatpush1.bf16.msra.mxu1 %v2625_v17  ;;  %v2710_v4 = vld [vmem:[%s2887_s26 + $0xb0] ss:$12 sps:$4 sm:$0xff]   ;;  %v2703_v5 = vld [vmem:[%s2887_s26 + $0x78] ss:$12 sps:$4 sm:$0xff]   ;;  %v2704_v6 = vld [vmem:[%s2887_s26 + $0x94] ss:$12 sps:$4 sm:$0xff]  }
  0x29   : > { %1081 = vmatprep.subr.bf16.mxu1 %v2626_v20  ;;  %v2714_v7 = vld [vmem:[%s2887_s26 + $0xc8] ss:$12 sps:$4 sm:$0xff]   ;;  %v2707_v8 = vld [vmem:[%s2887_s26 + $0x90] ss:$12 sps:$4 sm:$0xff]   ;;  %v2708_v9 = vld [vmem:[%s2887_s26 + $0xac] ss:$12 sps:$4 sm:$0xff]  }
  0x2a   : > { %1353 = vmatpush1.bf16.msra.mxu0 %v2666_v29  ;;  %v2718_v10 = vld [vmem:[%s2887_s26 + $0xe0] ss:$12 sps:$4 sm:$0xff]   ;;  %v2711_v11 = vld [vmem:[%s2887_s26 + $0xa8] ss:$12 sps:$4 sm:$0xff]   ;;  %v2712_v12 = vld [vmem:[%s2887_s26 + $0xc4] ss:$12 sps:$4 sm:$0xff]  }
  0x2b   : > { %1354 = vmatprep.subr.bf16.mxu0 %v2668_v31  ;;  %v2722_v13 = vld [vmem:[%s2887_s26 + $0xf8] ss:$12 sps:$4 sm:$0xff]   ;;  %v2715_v14 = vld [vmem:[%s2887_s26 + $0xc0] ss:$12 sps:$4 sm:$0xff]   ;;  %v2716_v15 = vld [vmem:[%s2887_s26 + $0xdc] ss:$12 sps:$4 sm:$0xff]  }
  0x2c   : > { %1082 = vmatpush1.bf16.msra.mxu1 %v2628_v22  ;;  %v2726_v16 = vld [vmem:[%s2887_s26 + $0x110] ss:$12 sps:$4 sm:$0xff]   ;;  %v2719_v17 = vld [vmem:[%s2887_s26 + $0xd8] ss:$12 sps:$4 sm:$0xff]   ;;  %v2720_v18 = vld [vmem:[%s2887_s26 + $0xf4] ss:$12 sps:$4 sm:$0xff]  }
  0x2d   : > { %1083 = vmatprep.subr.bf16.mxu1 %v2629_v24  ;;  %v2730_v19 = vld [vmem:[%s2887_s26 + $0x128] ss:$12 sps:$4 sm:$0xff]   ;;  %v2723_v20 = vld [vmem:[%s2887_s26 + $0xf0] ss:$12 sps:$4 sm:$0xff]   ;;  %v2724_v21 = vld [vmem:[%s2887_s26 + $0x10c] ss:$12 sps:$4 sm:$0xff]  }
  0x2e   : > { %1355 = vmatpush1.bf16.msra.mxu0 %v2672_v35  ;;  %v2734_v22 = vld [vmem:[%s2887_s26 + $0x140] ss:$12 sps:$4 sm:$0xff]   ;;  %v2727_v23 = vld [vmem:[%s2887_s26 + $0x108] ss:$12 sps:$4 sm:$0xff]   ;;  %v2728_v24 = vld [vmem:[%s2887_s26 + $0x124] ss:$12 sps:$4 sm:$0xff]  }
  0x2f   : > { %1356 = vmatprep.subr.bf16.mxu0 %v2674_v36  ;;  %v2731_v26 = vld [vmem:[%s2887_s26 + $0x120] ss:$12 sps:$4 sm:$0xff]   ;;  %v2732_v27 = vld [vmem:[%s2887_s26 + $0x13c] ss:$12 sps:$4 sm:$0xff]   ;;  %v2735_v29 = vld [vmem:[%s2887_s26 + $0x138] ss:$12 sps:$4 sm:$0xff]  }
  0x30   : > { %1084 = vmatpush1.bf16.msra.mxu1 %v2631_v25  ;;  %v2738_v25 = vld [vmem:[%s2887_s26 + $0x158] ss:$12 sps:$4 sm:$0xff]   ;;  %v2746_v31 = vld [vmem:[%s2887_s26 + $0x188] ss:$12 sps:$4 sm:$0xff]   ;;  %v2750_v34 = vld [vmem:[%s2887_s26 + $0x1a0] ss:$12 sps:$4 sm:$0xff]  }
  0x31   : > { %1085 = vmatprep.subr.bf16.mxu1 %v2634_v28  ;;  %v2742_v28 = vld [vmem:[%s2887_s26 + $0x170] ss:$12 sps:$4 sm:$0xff]   ;;  %v2743_v35 = vld [vmem:[%s2887_s26 + $0x168] ss:$12 sps:$4 sm:$0xff]  }
  0x32   : > { %1357 = vmatpush1.bf16.msra.mxu0 %v2678_v38  ;;  %v2744_v36 = vld [vmem:[%s2887_s26 + $0x184] ss:$12 sps:$4 sm:$0xff]   ;;  %v2747_v38 = vld [vmem:[%s2887_s26 + $0x180] ss:$12 sps:$4 sm:$0xff]  }
  0x34   : > { %1086 = vmatpush1.bf16.msra.mxu1 %v2637_v30  ;;  %v2736_v30 = vld [vmem:[%s2887_s26 + $0x154] ss:$12 sps:$4 sm:$0xff]  }
  0x35   : > { %1087 = vmatprep.subr.bf16.mxu1 %v2640_v32  ;;  %1375 = vmatmul.mubr.bf16.vlgmr.msra.gmra.mrb[0].mxu0 %v2683_v41  ;;  %v2739_v32 = vld [vmem:[%s2887_s26 + $0x150] ss:$12 sps:$4 sm:$0xff]   ;;  %v2751_v41 = vld [vmem:[%s2887_s26 + $0x198] ss:$12 sps:$4 sm:$0xff]  }
  0x36   : > { %1384 = vmatprep.mubr.bf16.mxu0 %v2800_v0 }
  0x38   : > { %1088 = vmatpush1.bf16.msra.mxu1 %v2643_v33  ;;  %v2740_v33 = vld [vmem:[%s2887_s26 + $0x16c] ss:$12 sps:$4 sm:$0xff]  }
  0x39   : > { %1089 = vmatprep.subr.bf16.mxu1 %v2646_v37  ;;  %v2754_v37 = vld [vmem:[%s2887_s26 + $0x1b8] ss:$12 sps:$4 sm:$0xff]  }
  0x3c   : > { %1090 = vmatpush1.bf16.msra.mxu1 %v2649_v39  ;;  %v2748_v39 = vld [vmem:[%s2887_s26 + $0x19c] ss:$12 sps:$4 sm:$0xff]  }
  0x3d   : > { %1091 = vmatprep.subr.bf16.mxu1 %v2652_v40  ;;  %1385 = vmatmul.mubr.bf16.gmra.mrb[4].mxu0 %v2686_v46  ;;  %v2758_v40 = vld [vmem:[%s2887_s26 + $0x1d0] ss:$12 sps:$4 sm:$0xff]   ;;  %v2766_v46 = vld [vmem:[%s2887_s26 + $0x200] ss:$12 sps:$4 sm:$0xff]  }
  0x3e   : > { %1394 = vmatprep.mubr.bf16.mxu0 %v2800_v0 }
  0x40   : > { %1092 = vmatpush1.bf16.msra.mxu1 %v2655_v42  ;;  %v2752_v42 = vld [vmem:[%s2887_s26 + $0x1b4] ss:$12 sps:$4 sm:$0xff]  }
  0x41   : > { %1093 = vmatprep.subr.bf16.mxu1 %v2658_v43  ;;  %v2762_v43 = vld [vmem:[%s2887_s26 + $0x1e8] ss:$12 sps:$4 sm:$0xff]  }
  0x44   : > { %1094 = vmatpush1.bf16.msra.mxu1 %v2661_v44  ;;  %v2755_v44 = vld [vmem:[%s2887_s26 + $0x1b0] ss:$12 sps:$4 sm:$0xff]  }
  0x45   : > { %1095 = vmatprep.subr.bf16.mxu1 %v2664_v45  ;;  %1395 = vmatmul.mubr.bf16.gmra.mrb[8].mxu0 %v2690_v51  ;;  %v2756_v45 = vld [vmem:[%s2887_s26 + $0x1cc] ss:$12 sps:$4 sm:$0xff]   ;;  %v2764_v51 = vld [vmem:[%s2887_s26 + $0x1fc] ss:$12 sps:$4 sm:$0xff]  }
  0x46   : > { %1404 = vmatprep.mubr.bf16.mxu0 %v2800_v0 }
  0x48   : > { %1096 = vmatpush1.bf16.msra.mxu1 %v2667_v47  ;;  %v2759_v47 = vld [vmem:[%s2887_s26 + $0x1c8] ss:$12 sps:$4 sm:$0xff]  }
  0x49   : > { %1097 = vmatprep.subr.bf16.mxu1 %v2670_v48  ;;  %v2760_v48 = vld [vmem:[%s2887_s26 + $0x1e4] ss:$12 sps:$4 sm:$0xff]  }
  0x4c   : > { %1098 = vmatpush1.bf16.msra.mxu1 %v2673_v49  ;;  %v2770_v49 = vld [vmem:[%s2887_s26 + $0x218] ss:$12 sps:$4 sm:$0xff]  }
  0x4d   : > { %1099 = vmatprep.subr.bf16.mxu1 %v2676_v50  ;;  %1405 = vmatmul.mubr.bf16.gmra.mrb[12].mxu0 %v2694_v55  ;;  %v2763_v50 = vld [vmem:[%s2887_s26 + $0x1e0] ss:$12 sps:$4 sm:$0xff]   ;;  %v2771_v55 = vld [vmem:[%s2887_s26 + $0x210] ss:$12 sps:$4 sm:$0xff]  }
  0x4e   : > { %1414 = vmatprep.mubr.bf16.mxu0 %v2800_v0 }
  0x50   : > { %1100 = vmatpush1.bf16.msra.mxu1 %v2679_v52  ;;  %v2774_v52 = vld [vmem:[%s2887_s26 + $0x230] ss:$12 sps:$4 sm:$0xff]  }
  0x53   : > { %1102 = vmatmul.mubr.bf16.vlgmr.msra.gmra.mrb[0].mxu1 %v2680_v53  ;;  %v2767_v53 = vld [vmem:[%s2887_s26 + $0x1f8] ss:$12 sps:$4 sm:$0xff]  }
  0x54   : > { %1111 = vmatprep.mubr.bf16.mxu1 %v2684_v54  ;;  %v2768_v54 = vld [vmem:[%s2887_s26 + $0x214] ss:$12 sps:$4 sm:$0xff]  }
  0x55   : > { %1415 = vmatmul.mubr.bf16.gmra.mrb[16].mxu0 %v2698_v58 }
  0x56   : > { %1424 = vmatprep.mubr.bf16.mxu0 %v2800_v0 }
  0x5b   : > { %1112 = vmatmul.mubr.bf16.gmra.mrb[4].mxu1 %v2687_v56  ;;  %v2772_v56 = vld [vmem:[%s2887_s26 + $0x22c] ss:$12 sps:$4 sm:$0xff]  }
  0x5c   : > { %1121 = vmatprep.mubr.bf16.mxu1 %v2688_v57  ;;  %v2775_v57 = vld [vmem:[%s2887_s26 + $0x228] ss:$12 sps:$4 sm:$0xff]  }
  0x5d   : > { %1425 = vmatmul.mubr.bf16.gmra.mrb[20].mxu0 %v2702_v61  ;;  %v435_v61 = vlaneseq }
  0x5e   : > { %1434 = vmatprep.mubr.bf16.mxu0 %v2800_v0 }
  0x63   : > { %1122 = vmatmul.mubr.bf16.gmra.mrb[8].mxu1 %v2691_v59 }
  0x64   : > { %1131 = vmatprep.mubr.bf16.mxu1 %v2692_v60 }
  0x65   : > { %1435 = vmatmul.mubr.bf16.gmra.mrb[24].mxu0 %v2706_v1  ;;  %v436_v1 = vshrl.u32 %v435_v61, 7 }
  0x66   : > { %1444 = vmatprep.mubr.bf16.mxu0 %v2800_v0 }
  0x6b   : > { %1132 = vmatmul.mubr.bf16.gmra.mrb[12].mxu1 %v2695_v62 }
  0x6c   : > { %1141 = vmatprep.mubr.bf16.mxu1 %v2696_v63 }
  0x6d   : > { %1445 = vmatmul.mubr.bf16.gmra.mrb[28].mxu0 %v2710_v4  ;;  %v437_v4 = vsub.s32 0, %v436_v1 }
  0x6e   : > { %1454 = vmatprep.mubr.bf16.mxu0 %v2800_v0 }
  0x73   : > { %1142 = vmatmul.mubr.bf16.gmra.mrb[16].mxu1 %v2699_v2 }
  0x74   : > { %1151 = vmatprep.mubr.bf16.mxu1 %v2700_v3 }
  0x75   : > { %1455 = vmatmul.mubr.bf16.gmra.mrb[32].mxu0 %v2714_v7 }
  0x76   : > { %1464 = vmatprep.mubr.bf16.mxu0 %v2800_v0 }
  0x7b   : > { %1152 = vmatmul.mubr.bf16.gmra.mrb[20].mxu1 %v2703_v5  ;;  %v433_v5 = vld [vmem:[%s273_s30] sm:$0x3] }
  0x7c   : > { %1161 = vmatprep.mubr.bf16.mxu1 %v2704_v6  ;;  %v441_v6 = vsub.s32 1, %v436_v1 }
  0x7d   : > { %1465 = vmatmul.mubr.bf16.gmra.mrb[36].mxu0 %v2718_v10 }
  0x7e   : > { %1474 = vmatprep.mubr.bf16.mxu0 %v2800_v0 }
  0x83   : > { %1162 = vmatmul.mubr.bf16.gmra.mrb[24].mxu1 %v2707_v8 }
  0x84   : > { %1171 = vmatprep.mubr.bf16.mxu1 %v2708_v9  ;;  %v3011_v9 = vrot.slane %v433_v5, %v437_v4 }
  0x85   : > { %1475 = vmatmul.mubr.bf16.gmra.mrb[40].mxu0 %v2722_v13 }
  0x86   : > { %1484 = vmatprep.mubr.bf16.mxu0 %v2800_v0 }
  0x8b   : > { %1172 = vmatmul.mubr.bf16.gmra.mrb[28].mxu1 %v2711_v11  ;;  %v3015_v11 = vrot.slane %v433_v5, %v441_v6 }
  0x8c   : > { %1181 = vmatprep.mubr.bf16.mxu1 %v2712_v12 }
  0x8d   : > { %1485 = vmatmul.mubr.bf16.gmra.mrb[44].mxu0 %v2726_v16 }
  0x8e   : > { %1494 = vmatprep.mubr.bf16.mxu0 %v2800_v0 }
  0x93   : > { %1182 = vmatmul.mubr.bf16.gmra.mrb[32].mxu1 %v2715_v14 }
  0x94   : > { %1191 = vmatprep.mubr.bf16.mxu1 %v2716_v15 }
  0x95   : > { %1495 = vmatmul.mubr.bf16.gmra.mrb[48].mxu0 %v2730_v19 }
  0x96   : > { %1504 = vmatprep.mubr.bf16.mxu0 %v2800_v0 }
  0x9b   : > { %1192 = vmatmul.mubr.bf16.gmra.mrb[36].mxu1 %v2719_v17 }
  0x9c   : > { %1201 = vmatprep.mubr.bf16.mxu1 %v2720_v18 }
  0x9d   : > { %1505 = vmatmul.mubr.bf16.gmra.mrb[52].mxu0 %v2734_v22 }
  0x9e   : > { %1514 = vmatprep.mubr.bf16.mxu0 %v2800_v0 }
  0xa3   : > { %1202 = vmatmul.mubr.bf16.gmra.mrb[40].mxu1 %v2723_v20 }
  0xa4   : > { %1211 = vmatprep.mubr.bf16.mxu1 %v2724_v21 }
  0xa5   : > { %1515 = vmatmul.mubr.bf16.gmra.mrb[56].mxu0 %v2738_v25 }
  0xa6   : > { %1524 = vmatprep.mubr.bf16.mxu0 %v2800_v0 }
  0xab   : > { %1212 = vmatmul.mubr.bf16.gmra.mrb[44].mxu1 %v2727_v23 }
  0xac   : > { %1221 = vmatprep.mubr.bf16.mxu1 %v2728_v24 }
  0xad   : > { %1525 = vmatmul.mubr.bf16.gmra.mrb[60].mxu0 %v2742_v28 }
  0xae   : > { %1534 = vmatprep.mubr.bf16.mxu0 %v2800_v0 }
  0xb3   : > { %1222 = vmatmul.mubr.bf16.gmra.mrb[48].mxu1 %v2731_v26 }
  0xb4   : > { %1231 = vmatprep.mubr.bf16.mxu1 %v2732_v27 }
  0xb5   : > { %1535 = vmatmul.mubr.bf16.gmra.mrb[64].mxu0 %v2746_v31 }
  0xb6   : > { %1544 = vmatprep.mubr.bf16.mxu0 %v2800_v0 }
  0xbb   : > { %1232 = vmatmul.mubr.bf16.gmra.mrb[52].mxu1 %v2735_v29 }
  0xbc   : > { %1241 = vmatprep.mubr.bf16.mxu1 %v2736_v30 }
  0xbd   : > { %1545 = vmatmul.mubr.bf16.gmra.mrb[68].mxu0 %v2750_v34 }
  0xbe   : > { %1554 = vmatprep.mubr.bf16.mxu0 %v2800_v0 }
  0xc3   : > { %1242 = vmatmul.mubr.bf16.gmra.mrb[56].mxu1 %v2739_v32 }
  0xc4   : > { %1251 = vmatprep.mubr.bf16.mxu1 %v2740_v33 }
  0xc5   : > { %1555 = vmatmul.mubr.bf16.gmra.mrb[72].mxu0 %v2754_v37 }
  0xc6   : > { %1564 = vmatprep.mubr.bf16.mxu0 %v2800_v0 }
  0xcb   : > { %1252 = vmatmul.mubr.bf16.gmra.mrb[60].mxu1 %v2743_v35 }
  0xcc   : > { %1261 = vmatprep.mubr.bf16.mxu1 %v2744_v36 }
  0xcd   : > { %1565 = vmatmul.mubr.bf16.gmra.mrb[76].mxu0 %v2758_v40 }
  0xce   : > { %1574 = vmatprep.mubr.bf16.mxu0 %v2800_v0 }
  0xd3   : > { %1262 = vmatmul.mubr.bf16.gmra.mrb[64].mxu1 %v2747_v38 }
  0xd4   : > { %1271 = vmatprep.mubr.bf16.mxu1 %v2748_v39 }
  0xd5   : > { %1575 = vmatmul.mubr.bf16.gmra.mrb[80].mxu0 %v2762_v43 }
  0xd6   : > { %1584 = vmatprep.mubr.bf16.mxu0 %v2800_v0 }
  0xdb   : > { %1272 = vmatmul.mubr.bf16.gmra.mrb[68].mxu1 %v2751_v41 }
  0xdc   : > { %1281 = vmatprep.mubr.bf16.mxu1 %v2752_v42 }
  0xdd   : > { %1585 = vmatmul.mubr.bf16.gmra.mrb[84].mxu0 %v2766_v46 }
  0xde   : > { %1594 = vmatprep.mubr.bf16.mxu0 %v2800_v0 }
  0xe3   : > { %1282 = vmatmul.mubr.bf16.gmra.mrb[72].mxu1 %v2755_v44 }
  0xe4   : > { %1291 = vmatprep.mubr.bf16.mxu1 %v2756_v45 }
  0xe5   : > { %1595 = vmatmul.mubr.bf16.gmra.mrb[88].mxu0 %v2770_v49 }
  0xe6   : > { %1604 = vmatprep.mubr.bf16.mxu0 %v2800_v0 }
  0xeb   : > { %1292 = vmatmul.mubr.bf16.gmra.mrb[76].mxu1 %v2759_v47 }
  0xec   : > { %1301 = vmatprep.mubr.bf16.mxu1 %v2760_v48 }
  0xed   : > { %1605 = vmatmul.mubr.bf16.gmra.mrb[92].mxu0 %v2774_v52 }
  0xf3   : > { %1302 = vmatmul.mubr.bf16.gmra.mrb[80].mxu1 %v2763_v50 }
  0xf4   : > { %1311 = vmatprep.mubr.bf16.mxu1 %v2764_v51 }
  0xfb   : > { %1312 = vmatmul.mubr.bf16.gmra.mrb[84].mxu1 %v2767_v53 }
  0xfc   : > { %1321 = vmatprep.mubr.bf16.mxu1 %v2768_v54 }
 0x103   : > { %1322 = vmatmul.mubr.bf16.gmra.mrb[88].mxu1 %v2771_v55 }
 0x104   : > { %1331 = vmatprep.mubr.bf16.mxu1 %v2772_v56 }
 0x108   : > { %v1376_v58 = vpop.f32.mrb[0].mxu0 }
 0x109   : > { %v1378_v59 = vpop.f32.mrb[1].mxu0 }
 0x10a   : > { %v1380_v60 = vpop.f32.mrb[2].mxu0 }
 0x10b   : > { %1332 = vmatmul.mubr.bf16.gmra.mrb[92].mxu1 %v2775_v57  ;;  %v1382_v0 = vpop.f32.mrb[3].mxu0 }
 0x110   : > { %v1386_v62 = vpop.f32.mrb[4].mxu0 }
 0x111   : > { %v1388_v63 = vpop.f32.mrb[5].mxu0 }
 0x112   : > { %v1390_v2 = vpop.f32.mrb[6].mxu0 }
 0x113   : > { %v1392_v3 = vpop.f32.mrb[7].mxu0 }
 0x118   : > { %v3007_v7 = vpop.f32.mrb[8].mxu0 }
 0x119   : > { %v3009_v8 = vpop.f32.mrb[9].mxu0 }
 0x11a   : > { %v3013_v10 = vpop.f32.mrb[10].mxu0 }
 0x11b   : > { %v3017_v12 = vpop.f32.mrb[11].mxu0 }
 0x120   : > { %v3023_v21 = vpop.f32.mrb[12].mxu0 }
 0x121   : > { %v3031_v24 = vpop.f32.mrb[13].mxu0 }
 0x122   : > { %v3033_v27 = vpop.f32.mrb[14].mxu0 }
 0x123   : > { %v3035_v30 = vpop.f32.mrb[15].mxu0 }
 0x126   : > { %v1103_v13 = vpop.f32.mrb[0].mxu1 }
 0x127   : > { %v1104_v14 = vadd.f32 %v1103_v13, %v3011_v9  ;;  %v1105_v15 = vpop.f32.mrb[1].mxu1 }
 0x128   : > { %v1106_v16 = vadd.f32 %v1105_v15, %v3015_v11  ;;  %v1107_v17 = vpop.f32.mrb[2].mxu1  ;;  %v3044_v42 = vpop.f32.mrb[16].mxu0 }
 0x129   : > { %v1377_v18 = vadd.f32 %v1376_v58, %v1104_v14  ;;  %v1108_v19 = vadd.f32 %v1107_v17, %v3011_v9  ;;  %v1109_v20 = vpop.f32.mrb[3].mxu1  ;;  %v3047_v45 = vpop.f32.mrb[17].mxu0 }
 0x12a   : > { %v1379_v22 = vadd.f32 %v1378_v59, %v1106_v16  ;;  %v1110_v23 = vadd.f32 %v1109_v20, %v3015_v11  ;;  %v3049_v48 = vpop.f32.mrb[18].mxu0 }
 0x12b   : > { %v1615_v25 = vmax.f32 %v1377_v18, 0.0  ;;  %v1381_v26 = vadd.f32 %v1380_v60, %v1108_v19  ;;  %v3051_v51 = vpop.f32.mrb[19].mxu0 }
 0x12c   : > { %v1616_v28 = vmax.f32 %v1379_v22, 0.0  ;;  %v1383_v29 = vadd.f32 %v1382_v0, %v1110_v23 }
 0x12d   : > { %1954 = vst [vmem:[%s3028_s8] sm:$0xff] %v1615_v25  ;;  %v1617_v31 = vmax.f32 %v1381_v26, 0.0 }
 0x12e   : > { %1955 = vst [vmem:[%s3028_s8 + $0x8] sm:$0xff] %v1616_v28  ;;  %v1618_v32 = vmax.f32 %v1383_v29, 0.0  ;;  %v1113_v33 = vpop.f32.mrb[4].mxu1 }
 0x12f   : > { %1956 = vst [vmem:[%s3028_s8 + $0x10] sm:$0xff] %v1617_v31  ;;  %v2056_v34 = vadd.f32 %v1617_v31, %v1615_v25  ;;  %v1114_v35 = vadd.f32 %v1113_v33, %v3011_v9  ;;  %v1115_v36 = vpop.f32.mrb[5].mxu1 }
 0x130   : > { %1957 = vst [vmem:[%s3028_s8 + $0x18] sm:$0xff] %v1618_v32  ;;  %v1116_v37 = vadd.f32 %v1115_v36, %v3015_v11  ;;  %v1117_v38 = vpop.f32.mrb[6].mxu1 }
 0x131   : > { %v1387_v39 = vadd.f32 %v1386_v62, %v1114_v35  ;;  %v1118_v40 = vadd.f32 %v1117_v38, %v3011_v9  ;;  %v1119_v41 = vpop.f32.mrb[7].mxu1 }
 0x132   : > { %v1389_v43 = vadd.f32 %v1388_v63, %v1116_v37  ;;  %v1120_v44 = vadd.f32 %v1119_v41, %v3015_v11  ;;  %v3061_v63 = vpop.f32.mrb[20].mxu0 }
 0x133   : > { %v1619_v46 = vmax.f32 %v1387_v39, 0.0  ;;  %v1391_v47 = vadd.f32 %v1390_v2, %v1118_v40 }
 0x134   : > { %v1620_v49 = vmax.f32 %v1389_v43, 0.0  ;;  %v1393_v50 = vadd.f32 %v1392_v3, %v1120_v44  ;;  %v3065_v3 = vpop.f32.mrb[21].mxu0 }
 0x135   : > { %1958 = vst [vmem:[%s3028_s8 + $0x20] sm:$0xff] %v1619_v46  ;;  %v2057_v52 = vadd.f32 %v2056_v34, %v1619_v46  ;;  %v1621_v53 = vmax.f32 %v1391_v47, 0.0  ;;  %v3068_v6 = vpop.f32.mrb[22].mxu0 }
 0x136   : > { %1959 = vst [vmem:[%s3028_s8 + $0x28] sm:$0xff] %v1620_v49  ;;  %v1622_v54 = vmax.f32 %v1393_v50, 0.0  ;;  %v1123_v55 = vpop.f32.mrb[8].mxu1  ;;  %v3071_v14 = vpop.f32.mrb[23].mxu0 }
 0x137   : > { %1960 = vst [vmem:[%s3028_s8 + $0x30] sm:$0xff] %v1621_v53  ;;  %v2058_v56 = vadd.f32 %v2057_v52, %v1621_v53  ;;  %v1124_v57 = vadd.f32 %v1123_v55, %v3011_v9  ;;  %v1125_v58 = vpop.f32.mrb[9].mxu1 }
 0x138   : > { %1961 = vst [vmem:[%s3028_s8 + $0x38] sm:$0xff] %v1622_v54  ;;  %v1126_v59 = vadd.f32 %v1125_v58, %v3015_v11  ;;  %v1127_v60 = vpop.f32.mrb[10].mxu1  ;;  %v3081_v26 = vpop.f32.mrb[24].mxu0 }
 0x139   : > { %v1397_v0 = vadd.f32 %v3007_v7, %v1124_v57  ;;  %v1128_v61 = vadd.f32 %v1127_v60, %v3011_v9  ;;  %v1129_v62 = vpop.f32.mrb[11].mxu1  ;;  %v3085_v31 = vpop.f32.mrb[25].mxu0 }
 0x13a   : > { %v1399_v1 = vadd.f32 %v3009_v8, %v1126_v59  ;;  %v1130_v2 = vadd.f32 %v1129_v62, %v3015_v11  ;;  %v3088_v34 = vpop.f32.mrb[26].mxu0 }
 0x13b   : > { %v1623_v4 = vmax.f32 %v1397_v0, 0.0  ;;  %v1401_v5 = vadd.f32 %v3013_v10, %v1128_v61  ;;  %v3091_v36 = vpop.f32.mrb[27].mxu0 }
 0x13c   : > { %v1624_v7 = vmax.f32 %v1399_v1, 0.0  ;;  %v1403_v13 = vadd.f32 %v3017_v12, %v1130_v2 }
 0x13d   : > { %1962 = vst [vmem:[%s3028_s8 + $0x40] sm:$0xff] %v1623_v4  ;;  %v2059_v15 = vadd.f32 %v2058_v56, %v1623_v4  ;;  %v1625_v16 = vmax.f32 %v1401_v5, 0.0 }
 0x13e   : > { %1963 = vst [vmem:[%s3028_s8 + $0x48] sm:$0xff] %v1624_v7  ;;  %v1626_v8 = vmax.f32 %v1403_v13, 0.0  ;;  %v1133_v17 = vpop.f32.mrb[12].mxu1 }
 0x13f   : > { %1964 = vst [vmem:[%s3028_s8 + $0x50] sm:$0xff] %v1625_v16  ;;  %v2060_v18 = vadd.f32 %v2059_v15, %v1625_v16  ;;  %v1134_v19 = vadd.f32 %v1133_v17, %v3011_v9  ;;  %v1135_v20 = vpop.f32.mrb[13].mxu1 }
 0x140   : > { %1965 = vst [vmem:[%s3028_s8 + $0x58] sm:$0xff] %v1626_v8  ;;  %v1136_v10 = vadd.f32 %v1135_v20, %v3015_v11  ;;  %v1137_v22 = vpop.f32.mrb[14].mxu1  ;;  %v3101_v49 = vpop.f32.mrb[28].mxu0 }
 0x141   : > { %v1407_v12 = vadd.f32 %v3023_v21, %v1134_v19  ;;  %v1138_v23 = vadd.f32 %v1137_v22, %v3011_v9  ;;  %v1139_v25 = vpop.f32.mrb[15].mxu1  ;;  %v3105_v53 = vpop.f32.mrb[29].mxu0 }
 0x142   : > { %v1409_v28 = vadd.f32 %v3031_v24, %v1136_v10  ;;  %v1140_v29 = vadd.f32 %v1139_v25, %v3015_v11  ;;  %v3108_v56 = vpop.f32.mrb[30].mxu0 }
 0x143   : > { %v1627_v32 = vmax.f32 %v1407_v12, 0.0  ;;  %v1411_v33 = vadd.f32 %v3033_v27, %v1138_v23  ;;  %v3111_v58 = vpop.f32.mrb[31].mxu0 }
 0x144   : > { %v1628_v21 = vmax.f32 %v1409_v28, 0.0  ;;  %v1413_v35 = vadd.f32 %v3035_v30, %v1140_v29 }
 0x145   : > { %1966 = vst [vmem:[%s3028_s8 + $0x60] sm:$0xff] %v1627_v32  ;;  %v2061_v37 = vadd.f32 %v2060_v18, %v1627_v32  ;;  %v1629_v38 = vmax.f32 %v1411_v33, 0.0 }
 0x146   : > { %1967 = vst [vmem:[%s3028_s8 + $0x68] sm:$0xff] %v1628_v21  ;;  %v1630_v24 = vmax.f32 %v1413_v35, 0.0  ;;  %v1143_v39 = vpop.f32.mrb[16].mxu1 }
 0x147   : > { %1968 = vst [vmem:[%s3028_s8 + $0x70] sm:$0xff] %v1629_v38  ;;  %v2062_v40 = vadd.f32 %v2061_v37, %v1629_v38  ;;  %v1144_v41 = vadd.f32 %v1143_v39, %v3011_v9  ;;  %v1145_v43 = vpop.f32.mrb[17].mxu1 }
 0x148   : > { %1969 = vst [vmem:[%s3028_s8 + $0x78] sm:$0xff] %v1630_v24  ;;  %v1146_v27 = vadd.f32 %v1145_v43, %v3015_v11  ;;  %v1147_v44 = vpop.f32.mrb[18].mxu1  ;;  %v3121_v7 = vpop.f32.mrb[32].mxu0 }
 0x149   : > { %v1417_v30 = vadd.f32 %v3044_v42, %v1144_v41  ;;  %v1148_v46 = vadd.f32 %v1147_v44, %v3011_v9  ;;  %v1149_v47 = vpop.f32.mrb[19].mxu1  ;;  %v3125_v16 = vpop.f32.mrb[33].mxu0 }
 0x14a   : > { %v1419_v50 = vadd.f32 %v3047_v45, %v1146_v27  ;;  %v1150_v52 = vadd.f32 %v1149_v47, %v3015_v11  ;;  %v3128_v18 = vpop.f32.mrb[34].mxu0 }
 0x14b   : > { %v1631_v54 = vmax.f32 %v1417_v30, 0.0  ;;  %v1421_v55 = vadd.f32 %v3049_v48, %v1148_v46  ;;  %v3131_v20 = vpop.f32.mrb[35].mxu0 }
 0x14c   : > { %v1632_v42 = vmax.f32 %v1419_v50, 0.0  ;;  %v1423_v57 = vadd.f32 %v3051_v51, %v1150_v52 }
 0x14d   : > { %1970 = vst [vmem:[%s3028_s8 + $0x80] sm:$0xff] %v1631_v54  ;;  %v2063_v59 = vadd.f32 %v2062_v40, %v1631_v54  ;;  %v1633_v60 = vmax.f32 %v1421_v55, 0.0 }
 0x14e   : > { %1971 = vst [vmem:[%s3028_s8 + $0x88] sm:$0xff] %v1632_v42  ;;  %v1634_v45 = vmax.f32 %v1423_v57, 0.0  ;;  %v1153_v0 = vpop.f32.mrb[20].mxu1 }
 0x14f   : > { %1972 = vst [vmem:[%s3028_s8 + $0x90] sm:$0xff] %v1633_v60  ;;  %v2064_v61 = vadd.f32 %v2063_v59, %v1633_v60  ;;  %v1154_v62 = vadd.f32 %v1153_v0, %v3011_v9  ;;  %v1155_v1 = vpop.f32.mrb[21].mxu1 }
 0x150   : > { %1973 = vst [vmem:[%s3028_s8 + $0x98] sm:$0xff] %v1634_v45  ;;  %v1156_v48 = vadd.f32 %v1155_v1, %v3015_v11  ;;  %v1157_v2 = vpop.f32.mrb[22].mxu1  ;;  %v3141_v21 = vpop.f32.mrb[36].mxu0 }
 0x151   : > { %v1427_v51 = vadd.f32 %v3061_v63, %v1154_v62  ;;  %v1158_v4 = vadd.f32 %v1157_v2, %v3011_v9  ;;  %v1159_v5 = vpop.f32.mrb[23].mxu1  ;;  %v3145_v38 = vpop.f32.mrb[37].mxu0 }
 0x152   : > { %v1429_v13 = vadd.f32 %v3065_v3, %v1156_v48  ;;  %v1160_v15 = vadd.f32 %v1159_v5, %v3015_v11  ;;  %v3148_v40 = vpop.f32.mrb[38].mxu0 }
 0x153   : > { %v1635_v8 = vmax.f32 %v1427_v51, 0.0  ;;  %v1431_v17 = vadd.f32 %v3068_v6, %v1158_v4  ;;  %v3151_v43 = vpop.f32.mrb[39].mxu0 }
 0x154   : > { %v1636_v63 = vmax.f32 %v1429_v13, 0.0  ;;  %v1433_v19 = vadd.f32 %v3071_v14, %v1160_v15  ;;  %v2801_v15 = vmov 0.0  }
 0x155   : > { %1974 = vst [vmem:[%s3028_s8 + $0xa0] sm:$0xff] %v1635_v8  ;;  %v2065_v10 = vadd.f32 %v2064_v61, %v1635_v8  ;;  %v1637_v22 = vmax.f32 %v1431_v17, 0.0  ;;  %2054 = vst [vmem:[%s3179_s11] sm:$0x1] %v2801_v15 }
 0x156   : > { %1975 = vst [vmem:[%s3028_s8 + $0xa8] sm:$0xff] %v1636_v63  ;;  %v1638_v3 = vmax.f32 %v1433_v19, 0.0  ;;  %v1163_v12 = vpop.f32.mrb[24].mxu1 }
 0x157   : > { %1976 = vst [vmem:[%s3028_s8 + $0xb0] sm:$0xff] %v1637_v22  ;;  %v2066_v23 = vadd.f32 %v2065_v10, %v1637_v22  ;;  %v1164_v25 = vadd.f32 %v1163_v12, %v3011_v9  ;;  %v1165_v28 = vpop.f32.mrb[25].mxu1 }
 0x158   : > { %1977 = vst [vmem:[%s3028_s8 + $0xb8] sm:$0xff] %v1638_v3  ;;  %v1166_v6 = vadd.f32 %v1165_v28, %v3015_v11  ;;  %v1167_v29 = vpop.f32.mrb[26].mxu1  ;;  %v3161_v42 = vpop.f32.mrb[40].mxu0 }
 0x159   : > { %v1437_v14 = vadd.f32 %v3081_v26, %v1164_v25  ;;  %v1168_v32 = vadd.f32 %v1167_v29, %v3011_v9  ;;  %v1169_v33 = vpop.f32.mrb[27].mxu1  ;;  %v3165_v60 = vpop.f32.mrb[41].mxu0 }
 0x15a   : > { %v1439_v35 = vadd.f32 %v3085_v31, %v1166_v6  ;;  %v1170_v37 = vadd.f32 %v1169_v33, %v3015_v11  ;;  %v3168_v61 = vpop.f32.mrb[42].mxu0 }
 0x15b   : > { %v1639_v24 = vmax.f32 %v1437_v14, 0.0  ;;  %v1441_v39 = vadd.f32 %v3088_v34, %v1168_v32  ;;  %v3171_v1 = vpop.f32.mrb[43].mxu0 }
 0x15c   : > { %v1640_v26 = vmax.f32 %v1439_v35, 0.0  ;;  %v1443_v41 = vadd.f32 %v3091_v36, %v1170_v37 }
 0x15d   : > { %1978 = vst [vmem:[%s3028_s8 + $0xc0] sm:$0xff] %v1639_v24  ;;  %v2067_v27 = vadd.f32 %v2066_v23, %v1639_v24  ;;  %v1641_v44 = vmax.f32 %v1441_v39, 0.0 }
 0x15e   : > { %1979 = vst [vmem:[%s3028_s8 + $0xc8] sm:$0xff] %v1640_v26  ;;  %v1642_v31 = vmax.f32 %v1443_v41, 0.0  ;;  %v1173_v30 = vpop.f32.mrb[28].mxu1 }
 0x15f   : > { %1980 = vst [vmem:[%s3028_s8 + $0xd0] sm:$0xff] %v1641_v44  ;;  %v2068_v46 = vadd.f32 %v2067_v27, %v1641_v44  ;;  %v1174_v47 = vadd.f32 %v1173_v30, %v3011_v9  ;;  %v1175_v50 = vpop.f32.mrb[29].mxu1 }
 0x160   : > { %1981 = vst [vmem:[%s3028_s8 + $0xd8] sm:$0xff] %v1642_v31  ;;  %v1176_v34 = vadd.f32 %v1175_v50, %v3015_v11  ;;  %v1177_v52 = vpop.f32.mrb[30].mxu1  ;;  %v3188_v19 = vpop.f32.mrb[44].mxu0 }
 0x161   : > { %v1447_v36 = vadd.f32 %v3101_v49, %v1174_v47  ;;  %v1178_v54 = vadd.f32 %v1177_v52, %v3011_v9  ;;  %v1179_v55 = vpop.f32.mrb[31].mxu1  ;;  %v3192_v3 = vpop.f32.mrb[45].mxu0 }
 0x162   : > { %v1449_v57 = vadd.f32 %v3105_v53, %v1176_v34  ;;  %v1180_v59 = vadd.f32 %v1179_v55, %v3015_v11  ;;  %v3195_v25 = vpop.f32.mrb[46].mxu0 }
 0x163   : > { %v1643_v45 = vmax.f32 %v1447_v36, 0.0  ;;  %v1451_v0 = vadd.f32 %v3108_v56, %v1178_v54  ;;  %v3198_v6 = vpop.f32.mrb[47].mxu0 }
 0x164   : > { %v1644_v49 = vmax.f32 %v1449_v57, 0.0  ;;  %v1453_v62 = vadd.f32 %v3111_v58, %v1180_v59 }
 0x165   : > { %1982 = vst [vmem:[%s3028_s8 + $0xe0] sm:$0xff] %v1643_v45  ;;  %v2069_v48 = vadd.f32 %v2068_v46, %v1643_v45  ;;  %v1645_v2 = vmax.f32 %v1451_v0, 0.0 }
 0x166   : > { %1983 = vst [vmem:[%s3028_s8 + $0xe8] sm:$0xff] %v1644_v49  ;;  %v1646_v53 = vmax.f32 %v1453_v62, 0.0  ;;  %v1183_v51 = vpop.f32.mrb[32].mxu1 }
 0x167   : > { %1984 = vst [vmem:[%s3028_s8 + $0xf0] sm:$0xff] %v1645_v2  ;;  %v2070_v56 = vadd.f32 %v2069_v48, %v1645_v2  ;;  %v1184_v4 = vadd.f32 %v1183_v51, %v3011_v9  ;;  %v1185_v5 = vpop.f32.mrb[33].mxu1 }
 0x168   : > { %1985 = vst [vmem:[%s3028_s8 + $0xf8] sm:$0xff] %v1646_v53  ;;  %v1186_v58 = vadd.f32 %v1185_v5, %v3015_v11  ;;  %v1187_v13 = vpop.f32.mrb[34].mxu1  ;;  %v3208_v41 = vpop.f32.mrb[48].mxu0 }
 0x169   : > { %v1457_v8 = vadd.f32 %v3121_v7, %v1184_v4  ;;  %v1188_v17 = vadd.f32 %v1187_v13, %v3011_v9  ;;  %v1189_v63 = vpop.f32.mrb[35].mxu1  ;;  %v3212_v31 = vpop.f32.mrb[49].mxu0 }
 0x16a   : > { %v1459_v10 = vadd.f32 %v3125_v16, %v1186_v58  ;;  %v1190_v22 = vadd.f32 %v1189_v63, %v3015_v11  ;;  %v3215_v47 = vpop.f32.mrb[50].mxu0 }
 0x16b   : > { %v1647_v12 = vmax.f32 %v1457_v8, 0.0  ;;  %v1461_v23 = vadd.f32 %v3128_v18, %v1188_v17  ;;  %v3218_v34 = vpop.f32.mrb[51].mxu0 }
 0x16c   : > { %v1648_v7 = vmax.f32 %v1459_v10, 0.0  ;;  %v1463_v28 = vadd.f32 %v3131_v20, %v1190_v22 }
 0x16d   : > { %1986 = vst [vmem:[%s3028_s8 + $0x100] sm:$0xff] %v1647_v12  ;;  %v2071_v29 = vadd.f32 %v2070_v56, %v1647_v12  ;;  %v1649_v14 = vmax.f32 %v1461_v23, 0.0 }
 0x16e   : > { %1987 = vst [vmem:[%s3028_s8 + $0x108] sm:$0xff] %v1648_v7  ;;  %v1650_v16 = vmax.f32 %v1463_v28, 0.0  ;;  %v1193_v32 = vpop.f32.mrb[36].mxu1 }
 0x16f   : > { %1988 = vst [vmem:[%s3028_s8 + $0x110] sm:$0xff] %v1649_v14  ;;  %v2072_v33 = vadd.f32 %v2071_v29, %v1649_v14  ;;  %v1194_v35 = vadd.f32 %v1193_v32, %v3011_v9  ;;  %v1195_v37 = vpop.f32.mrb[37].mxu1 }
 0x170   : > { %1989 = vst [vmem:[%s3028_s8 + $0x118] sm:$0xff] %v1650_v16  ;;  %v1196_v18 = vadd.f32 %v1195_v37, %v3015_v11  ;;  %v1197_v24 = vpop.f32.mrb[38].mxu1  ;;  %v3228_v62 = vpop.f32.mrb[52].mxu0 }
 0x171   : > { %v1467_v20 = vadd.f32 %v3141_v21, %v1194_v35  ;;  %v1198_v39 = vadd.f32 %v1197_v24, %v3011_v9  ;;  %v1199_v26 = vpop.f32.mrb[39].mxu1  ;;  %v3232_v53 = vpop.f32.mrb[53].mxu0 }
 0x172   : > { %v1469_v27 = vadd.f32 %v3145_v38, %v1196_v18  ;;  %v1200_v44 = vadd.f32 %v1199_v26, %v3015_v11  ;;  %v3235_v4 = vpop.f32.mrb[54].mxu0 }
 0x173   : > { %v1651_v30 = vmax.f32 %v1467_v20, 0.0  ;;  %v1471_v46 = vadd.f32 %v3148_v40, %v1198_v39  ;;  %v3238_v58 = vpop.f32.mrb[55].mxu0 }
 0x174   : > { %v1652_v21 = vmax.f32 %v1469_v27, 0.0  ;;  %v1473_v50 = vadd.f32 %v3151_v43, %v1200_v44 }
 0x175   : > { %1990 = vst [vmem:[%s3028_s8 + $0x120] sm:$0xff] %v1651_v30  ;;  %v2073_v52 = vadd.f32 %v2072_v33, %v1651_v30  ;;  %v1653_v36 = vmax.f32 %v1471_v46, 0.0 }
 0x176   : > { %1991 = vst [vmem:[%s3028_s8 + $0x128] sm:$0xff] %v1652_v21  ;;  %v1654_v38 = vmax.f32 %v1473_v50, 0.0  ;;  %v1203_v54 = vpop.f32.mrb[40].mxu1 }
 0x177   : > { %1992 = vst [vmem:[%s3028_s8 + $0x130] sm:$0xff] %v1653_v36  ;;  %v2074_v55 = vadd.f32 %v2073_v52, %v1653_v36  ;;  %v1204_v57 = vadd.f32 %v1203_v54, %v3011_v9  ;;  %v1205_v59 = vpop.f32.mrb[41].mxu1 }
 0x178   : > { %1993 = vst [vmem:[%s3028_s8 + $0x138] sm:$0xff] %v1654_v38  ;;  %v1206_v40 = vadd.f32 %v1205_v59, %v3015_v11  ;;  %v1207_v45 = vpop.f32.mrb[42].mxu1  ;;  %v3248_v7 = vpop.f32.mrb[56].mxu0 }
 0x179   : > { %v1477_v43 = vadd.f32 %v3161_v42, %v1204_v57  ;;  %v1208_v0 = vadd.f32 %v1207_v45, %v3011_v9  ;;  %v1209_v49 = vpop.f32.mrb[43].mxu1  ;;  %v3252_v14 = vpop.f32.mrb[57].mxu0 }
 0x17a   : > { %v1479_v48 = vadd.f32 %v3165_v60, %v1206_v40  ;;  %v1210_v2 = vadd.f32 %v1209_v49, %v3015_v11  ;;  %v3255_v33 = vpop.f32.mrb[58].mxu0 }
 0x17b   : > { %v1655_v51 = vmax.f32 %v1477_v43, 0.0  ;;  %v1481_v56 = vadd.f32 %v3168_v61, %v1208_v0  ;;  %v3258_v37 = vpop.f32.mrb[59].mxu0 }
 0x17c   : > { %v1656_v42 = vmax.f32 %v1479_v48, 0.0  ;;  %v1483_v5 = vadd.f32 %v3171_v1, %v1210_v2 }
 0x17d   : > { %1994 = vst [vmem:[%s3028_s8 + $0x140] sm:$0xff] %v1655_v51  ;;  %v2075_v13 = vadd.f32 %v2074_v55, %v1655_v51  ;;  %v1657_v15 = vmax.f32 %v1481_v56, 0.0 }
 0x17e   : > { %1995 = vst [vmem:[%s3028_s8 + $0x148] sm:$0xff] %v1656_v42  ;;  %v1658_v60 = vmax.f32 %v1483_v5, 0.0  ;;  %v1213_v8 = vpop.f32.mrb[44].mxu1 }
 0x17f   : > { %1996 = vst [vmem:[%s3028_s8 + $0x150] sm:$0xff] %v1657_v15  ;;  %v2076_v17 = vadd.f32 %v2075_v13, %v1657_v15  ;;  %v1214_v63 = vadd.f32 %v1213_v8, %v3011_v9  ;;  %v1215_v10 = vpop.f32.mrb[45].mxu1 }
 0x180   : > { %1997 = vst [vmem:[%s3028_s8 + $0x158] sm:$0xff] %v1658_v60  ;;  %v1216_v61 = vadd.f32 %v1215_v10, %v3015_v11  ;;  %v1217_v22 = vpop.f32.mrb[46].mxu1  ;;  %v3268_v21 = vpop.f32.mrb[60].mxu0 }
 0x181   : > { %v1487_v1 = vadd.f32 %v3188_v19, %v1214_v63  ;;  %v1218_v12 = vadd.f32 %v1217_v22, %v3011_v9  ;;  %v1219_v23 = vpop.f32.mrb[47].mxu1  ;;  %v3272_v36 = vpop.f32.mrb[61].mxu0 }
 0x182   : > { %v1489_v28 = vadd.f32 %v3192_v3, %v1216_v61  ;;  %v1220_v29 = vadd.f32 %v1219_v23, %v3015_v11  ;;  %v3275_v55 = vpop.f32.mrb[62].mxu0 }
 0x183   : > { %v1659_v16 = vmax.f32 %v1487_v1, 0.0  ;;  %v1491_v32 = vadd.f32 %v3195_v25, %v1218_v12  ;;  %v3278_v59 = vpop.f32.mrb[63].mxu0 }
 0x184   : > { %v1660_v19 = vmax.f32 %v1489_v28, 0.0  ;;  %v1493_v35 = vadd.f32 %v3198_v6, %v1220_v29 }
 0x185   : > { %1998 = vst [vmem:[%s3028_s8 + $0x160] sm:$0xff] %v1659_v16  ;;  %v2077_v18 = vadd.f32 %v2076_v17, %v1659_v16  ;;  %v1661_v24 = vmax.f32 %v1491_v32, 0.0 }
 0x186   : > { %1999 = vst [vmem:[%s3028_s8 + $0x168] sm:$0xff] %v1660_v19  ;;  %v1662_v3 = vmax.f32 %v1493_v35, 0.0  ;;  %v1223_v20 = vpop.f32.mrb[48].mxu1 }
 0x187   : > { %2000 = vst [vmem:[%s3028_s8 + $0x170] sm:$0xff] %v1661_v24  ;;  %v2078_v39 = vadd.f32 %v2077_v18, %v1661_v24  ;;  %v1224_v26 = vadd.f32 %v1223_v20, %v3011_v9  ;;  %v1225_v27 = vpop.f32.mrb[49].mxu1 }
 0x188   : > { %2001 = vst [vmem:[%s3028_s8 + $0x178] sm:$0xff] %v1662_v3  ;;  %v1226_v25 = vadd.f32 %v1225_v27, %v3015_v11  ;;  %v1227_v44 = vpop.f32.mrb[50].mxu1  ;;  %v3288_v42 = vpop.f32.mrb[64].mxu0 }
 0x189   : > { %v1497_v6 = vadd.f32 %v3208_v41, %v1224_v26  ;;  %v1228_v30 = vadd.f32 %v1227_v44, %v3011_v9  ;;  %v1229_v46 = vpop.f32.mrb[51].mxu1  ;;  %v3292_v15 = vpop.f32.mrb[65].mxu0 }
 0x18a   : > { %v1499_v50 = vadd.f32 %v3212_v31, %v1226_v25  ;;  %v1230_v52 = vadd.f32 %v1229_v46, %v3015_v11  ;;  %v3295_v17 = vpop.f32.mrb[66].mxu0 }
 0x18b   : > { %v1663_v38 = vmax.f32 %v1497_v6, 0.0  ;;  %v1501_v54 = vadd.f32 %v3215_v47, %v1228_v30  ;;  %v3298_v10 = vpop.f32.mrb[67].mxu0 }
 0x18c   : > { %v1664_v41 = vmax.f32 %v1499_v50, 0.0  ;;  %v1503_v57 = vadd.f32 %v3218_v34, %v1230_v52 }
 0x18d   : > { %2002 = vst [vmem:[%s3028_s8 + $0x180] sm:$0xff] %v1663_v38  ;;  %v2079_v40 = vadd.f32 %v2078_v39, %v1663_v38  ;;  %v1665_v45 = vmax.f32 %v1501_v54, 0.0 }
 0x18e   : > { %2003 = vst [vmem:[%s3028_s8 + $0x188] sm:$0xff] %v1664_v41  ;;  %v1666_v31 = vmax.f32 %v1503_v57, 0.0  ;;  %v1233_v43 = vpop.f32.mrb[52].mxu1 }
 0x18f   : > { %2004 = vst [vmem:[%s3028_s8 + $0x190] sm:$0xff] %v1665_v45  ;;  %v2080_v0 = vadd.f32 %v2079_v40, %v1665_v45  ;;  %v1234_v49 = vadd.f32 %v1233_v43, %v3011_v9  ;;  %v1235_v48 = vpop.f32.mrb[53].mxu1 }
 0x190   : > { %2005 = vst [vmem:[%s3028_s8 + $0x198] sm:$0xff] %v1666_v31  ;;  %v1236_v47 = vadd.f32 %v1235_v48, %v3015_v11  ;;  %v1237_v2 = vpop.f32.mrb[54].mxu1  ;;  %v3308_v19 = vpop.f32.mrb[68].mxu0 }
 0x191   : > { %v1507_v34 = vadd.f32 %v3228_v62, %v1234_v49  ;;  %v1238_v51 = vadd.f32 %v1237_v2, %v3011_v9  ;;  %v1239_v56 = vpop.f32.mrb[55].mxu1  ;;  %v3312_v24 = vpop.f32.mrb[69].mxu0 }
 0x192   : > { %v1509_v5 = vadd.f32 %v3232_v53, %v1236_v47  ;;  %v1240_v13 = vadd.f32 %v1239_v56, %v3015_v11  ;;  %v3315_v39 = vpop.f32.mrb[70].mxu0 }
 0x193   : > { %v1667_v60 = vmax.f32 %v1507_v34, 0.0  ;;  %v1511_v8 = vadd.f32 %v3235_v4, %v1238_v51  ;;  %v3318_v27 = vpop.f32.mrb[71].mxu0 }
 0x194   : > { %v1668_v62 = vmax.f32 %v1509_v5, 0.0  ;;  %v1513_v63 = vadd.f32 %v3238_v58, %v1240_v13 }
 0x195   : > { %2006 = vst [vmem:[%s3028_s8 + $0x1a0] sm:$0xff] %v1667_v60  ;;  %v2081_v61 = vadd.f32 %v2080_v0, %v1667_v60  ;;  %v1669_v22 = vmax.f32 %v1511_v8, 0.0 }
 0x196   : > { %2007 = vst [vmem:[%s3028_s8 + $0x1a8] sm:$0xff] %v1668_v62  ;;  %v1670_v53 = vmax.f32 %v1513_v63, 0.0  ;;  %v1243_v1 = vpop.f32.mrb[56].mxu1 }
 0x197   : > { %2008 = vst [vmem:[%s3028_s8 + $0x1b0] sm:$0xff] %v1669_v22  ;;  %v2082_v12 = vadd.f32 %v2081_v61, %v1669_v22  ;;  %v1244_v23 = vadd.f32 %v1243_v1, %v3011_v9  ;;  %v1245_v28 = vpop.f32.mrb[57].mxu1 }
 0x198   : > { %2009 = vst [vmem:[%s3028_s8 + $0x1b8] sm:$0xff] %v1670_v53  ;;  %v1246_v4 = vadd.f32 %v1245_v28, %v3015_v11  ;;  %v1247_v29 = vpop.f32.mrb[58].mxu1  ;;  %v3328_v41 = vpop.f32.mrb[72].mxu0 }
 0x199   : > { %v1517_v58 = vadd.f32 %v3248_v7, %v1244_v23  ;;  %v1248_v16 = vadd.f32 %v1247_v29, %v3011_v9  ;;  %v1249_v32 = vpop.f32.mrb[59].mxu1  ;;  %v3332_v45 = vpop.f32.mrb[73].mxu0 }
 0x19a   : > { %v1519_v35 = vadd.f32 %v3252_v14, %v1246_v4  ;;  %v1250_v18 = vadd.f32 %v1249_v32, %v3015_v11  ;;  %v3335_v0 = vpop.f32.mrb[74].mxu0 }
 0x19b   : > { %v1671_v3 = vmax.f32 %v1517_v58, 0.0  ;;  %v1521_v20 = vadd.f32 %v3255_v33, %v1248_v16  ;;  %v3338_v48 = vpop.f32.mrb[75].mxu0 }
 0x19c   : > { %v1672_v7 = vmax.f32 %v1519_v35, 0.0  ;;  %v1523_v26 = vadd.f32 %v3258_v37, %v1250_v18 }
 0x19d   : > { %2010 = vst [vmem:[%s3028_s8 + $0x1c0] sm:$0xff] %v1671_v3  ;;  %v2083_v25 = vadd.f32 %v2082_v12, %v1671_v3  ;;  %v1673_v44 = vmax.f32 %v1521_v20, 0.0 }
 0x19e   : > { %2011 = vst [vmem:[%s3028_s8 + $0x1c8] sm:$0xff] %v1672_v7  ;;  %v1674_v14 = vmax.f32 %v1523_v26, 0.0  ;;  %v1253_v6 = vpop.f32.mrb[60].mxu1 }
 0x19f   : > { %2012 = vst [vmem:[%s3028_s8 + $0x1d0] sm:$0xff] %v1673_v44  ;;  %v2084_v30 = vadd.f32 %v2083_v25, %v1673_v44  ;;  %v1254_v46 = vadd.f32 %v1253_v6, %v3011_v9  ;;  %v1255_v50 = vpop.f32.mrb[61].mxu1 }
 0x1a0   : > { %2013 = vst [vmem:[%s3028_s8 + $0x1d8] sm:$0xff] %v1674_v14  ;;  %v1256_v33 = vadd.f32 %v1255_v50, %v3015_v11  ;;  %v1257_v52 = vpop.f32.mrb[62].mxu1  ;;  %v3348_v62 = vpop.f32.mrb[76].mxu0 }
 0x1a1   : > { %v1527_v37 = vadd.f32 %v3268_v21, %v1254_v46  ;;  %v1258_v38 = vadd.f32 %v1257_v52, %v3011_v9  ;;  %v1259_v54 = vpop.f32.mrb[63].mxu1  ;;  %v3352_v22 = vpop.f32.mrb[77].mxu0 }
 0x1a2   : > { %v1529_v57 = vadd.f32 %v3272_v36, %v1256_v33  ;;  %v1260_v40 = vadd.f32 %v1259_v54, %v3015_v11  ;;  %v3355_v12 = vpop.f32.mrb[78].mxu0 }
 0x1a3   : > { %v1675_v31 = vmax.f32 %v1527_v37, 0.0  ;;  %v1531_v43 = vadd.f32 %v3275_v55, %v1258_v38  ;;  %v3358_v28 = vpop.f32.mrb[79].mxu0 }
 0x1a4   : > { %v1676_v21 = vmax.f32 %v1529_v57, 0.0  ;;  %v1533_v49 = vadd.f32 %v3278_v59, %v1260_v40 }
 0x1a5   : > { %2014 = vst [vmem:[%s3028_s8 + $0x1e0] sm:$0xff] %v1675_v31  ;;  %v2085_v47 = vadd.f32 %v2084_v30, %v1675_v31  ;;  %v1677_v2 = vmax.f32 %v1531_v43, 0.0 }
 0x1a6   : > { %2015 = vst [vmem:[%s3028_s8 + $0x1e8] sm:$0xff] %v1676_v21  ;;  %v1678_v36 = vmax.f32 %v1533_v49, 0.0  ;;  %v1263_v34 = vpop.f32.mrb[64].mxu1 }
 0x1a7   : > { %2016 = vst [vmem:[%s3028_s8 + $0x1f0] sm:$0xff] %v1677_v2  ;;  %v2086_v51 = vadd.f32 %v2085_v47, %v1677_v2  ;;  %v1264_v56 = vadd.f32 %v1263_v34, %v3011_v9  ;;  %v1265_v5 = vpop.f32.mrb[65].mxu1 }
 0x1a8   : > { %2017 = vst [vmem:[%s3028_s8 + $0x1f8] sm:$0xff] %v1678_v36  ;;  %v1266_v55 = vadd.f32 %v1265_v5, %v3015_v11  ;;  %v1267_v13 = vpop.f32.mrb[66].mxu1  ;;  %v3368_v7 = vpop.f32.mrb[80].mxu0 }
 0x1a9   : > { %v1537_v59 = vadd.f32 %v3288_v42, %v1264_v56  ;;  %v1268_v60 = vadd.f32 %v1267_v13, %v3011_v9  ;;  %v1269_v8 = vpop.f32.mrb[67].mxu1  ;;  %v3372_v44 = vpop.f32.mrb[81].mxu0 }
 0x1aa   : > { %v1539_v63 = vadd.f32 %v3292_v15, %v1266_v55  ;;  %v1270_v61 = vadd.f32 %v1269_v8, %v3015_v11  ;;  %v3375_v30 = vpop.f32.mrb[82].mxu0 }
 0x1ab   : > { %v1679_v53 = vmax.f32 %v1537_v59, 0.0  ;;  %v1541_v1 = vadd.f32 %v3295_v17, %v1268_v60  ;;  %v3378_v50 = vpop.f32.mrb[83].mxu0 }
 0x1ac   : > { %v1680_v42 = vmax.f32 %v1539_v63, 0.0  ;;  %v1543_v23 = vadd.f32 %v3298_v10, %v1270_v61 }
 0x1ad   : > { %2018 = vst [vmem:[%s3028_s8 + $0x200] sm:$0xff] %v1679_v53  ;;  %v2087_v4 = vadd.f32 %v2086_v51, %v1679_v53  ;;  %v1681_v29 = vmax.f32 %v1541_v1, 0.0 }
 0x1ae   : > { %2019 = vst [vmem:[%s3028_s8 + $0x208] sm:$0xff] %v1680_v42  ;;  %v1682_v15 = vmax.f32 %v1543_v23, 0.0  ;;  %v1273_v58 = vpop.f32.mrb[68].mxu1 }
 0x1af   : > { %2020 = vst [vmem:[%s3028_s8 + $0x210] sm:$0xff] %v1681_v29  ;;  %v2088_v16 = vadd.f32 %v2087_v4, %v1681_v29  ;;  %v1274_v32 = vadd.f32 %v1273_v58, %v3011_v9  ;;  %v1275_v35 = vpop.f32.mrb[69].mxu1 }
 0x1b0   : > { %2021 = vst [vmem:[%s3028_s8 + $0x218] sm:$0xff] %v1682_v15  ;;  %v1276_v17 = vadd.f32 %v1275_v35, %v3015_v11  ;;  %v1277_v18 = vpop.f32.mrb[70].mxu1  ;;  %v3388_v21 = vpop.f32.mrb[84].mxu0 }
 0x1b1   : > { %v1547_v10 = vadd.f32 %v3308_v19, %v1274_v32  ;;  %v1278_v3 = vadd.f32 %v1277_v18, %v3011_v9  ;;  %v1279_v20 = vpop.f32.mrb[71].mxu1  ;;  %v3392_v2 = vpop.f32.mrb[85].mxu0 }
 0x1b2   : > { %v1549_v26 = vadd.f32 %v3312_v24, %v1276_v17  ;;  %v1280_v25 = vadd.f32 %v1279_v20, %v3015_v11  ;;  %v3395_v51 = vpop.f32.mrb[86].mxu0 }
 0x1b3   : > { %v1683_v14 = vmax.f32 %v1547_v10, 0.0  ;;  %v1551_v6 = vadd.f32 %v3315_v39, %v1278_v3  ;;  %v3398_v5 = vpop.f32.mrb[87].mxu0 }
 0x1b4   : > { %v1684_v19 = vmax.f32 %v1549_v26, 0.0  ;;  %v1553_v46 = vadd.f32 %v3318_v27, %v1280_v25 }
 0x1b5   : > { %2022 = vst [vmem:[%s3028_s8 + $0x220] sm:$0xff] %v1683_v14  ;;  %v2089_v33 = vadd.f32 %v2088_v16, %v1683_v14  ;;  %v1685_v52 = vmax.f32 %v1551_v6, 0.0 }
 0x1b6   : > { %2023 = vst [vmem:[%s3028_s8 + $0x228] sm:$0xff] %v1684_v19  ;;  %v1686_v24 = vmax.f32 %v1553_v46, 0.0  ;;  %v1283_v37 = vpop.f32.mrb[72].mxu1 }
 0x1b7   : > { %2024 = vst [vmem:[%s3028_s8 + $0x230] sm:$0xff] %v1685_v52  ;;  %v2090_v38 = vadd.f32 %v2089_v33, %v1685_v52  ;;  %v1284_v54 = vadd.f32 %v1283_v37, %v3011_v9  ;;  %v1285_v57 = vpop.f32.mrb[73].mxu1 }
 0x1b8   : > { %2025 = vst [vmem:[%s3028_s8 + $0x238] sm:$0xff] %v1686_v24  ;;  %v1286_v39 = vadd.f32 %v1285_v57, %v3015_v11  ;;  %v1287_v40 = vpop.f32.mrb[74].mxu1  ;;  %v3408_v42 = vpop.f32.mrb[88].mxu0 }
 0x1b9   : > { %v1557_v27 = vadd.f32 %v3328_v41, %v1284_v54  ;;  %v1288_v31 = vadd.f32 %v1287_v40, %v3011_v9  ;;  %v1289_v43 = vpop.f32.mrb[75].mxu1  ;;  %v3412_v29 = vpop.f32.mrb[89].mxu0 }
 0x1ba   : > { %v1559_v49 = vadd.f32 %v3332_v45, %v1286_v39  ;;  %v1290_v47 = vadd.f32 %v1289_v43, %v3015_v11  ;;  %v3415_v16 = vpop.f32.mrb[90].mxu0 }
 0x1bb   : > { %v1687_v36 = vmax.f32 %v1557_v27, 0.0  ;;  %v1561_v34 = vadd.f32 %v3335_v0, %v1288_v31  ;;  %v3418_v35 = vpop.f32.mrb[91].mxu0 }
 0x1bc   : > { %v1688_v41 = vmax.f32 %v1559_v49, 0.0  ;;  %v1563_v56 = vadd.f32 %v3338_v48, %v1290_v47 }
 0x1bd   : > { %2026 = vst [vmem:[%s3028_s8 + $0x240] sm:$0xff] %v1687_v36  ;;  %v2091_v55 = vadd.f32 %v2090_v38, %v1687_v36  ;;  %v1689_v13 = vmax.f32 %v1561_v34, 0.0 }
 0x1be   : > { %2027 = vst [vmem:[%s3028_s8 + $0x248] sm:$0xff] %v1688_v41  ;;  %v1690_v45 = vmax.f32 %v1563_v56, 0.0  ;;  %v1293_v59 = vpop.f32.mrb[76].mxu1 }
 0x1bf   : > { %2028 = vst [vmem:[%s3028_s8 + $0x250] sm:$0xff] %v1689_v13  ;;  %v2092_v60 = vadd.f32 %v2091_v55, %v1689_v13  ;;  %v1294_v8 = vadd.f32 %v1293_v59, %v3011_v9  ;;  %v1295_v63 = vpop.f32.mrb[77].mxu1 }
 0x1c0   : > { %2029 = vst [vmem:[%s3028_s8 + $0x258] sm:$0xff] %v1690_v45  ;;  %v1296_v0 = vadd.f32 %v1295_v63, %v3015_v11  ;;  %v1297_v61 = vpop.f32.mrb[78].mxu1  ;;  %v3428_v19 = vpop.f32.mrb[92].mxu0 }
 0x1c1   : > { %v1567_v48 = vadd.f32 %v3348_v62, %v1294_v8  ;;  %v1298_v53 = vadd.f32 %v1297_v61, %v3011_v9  ;;  %v1299_v1 = vpop.f32.mrb[79].mxu1  ;;  %v3432_v52 = vpop.f32.mrb[93].mxu0 }
 0x1c2   : > { %v1569_v23 = vadd.f32 %v3352_v22, %v1296_v0  ;;  %v1300_v4 = vadd.f32 %v1299_v1, %v3015_v11  ;;  %v3435_v38 = vpop.f32.mrb[94].mxu0 }
 0x1c3   : > { %v1691_v15 = vmax.f32 %v1567_v48, 0.0  ;;  %v1571_v58 = vadd.f32 %v3355_v12, %v1298_v53  ;;  %v3438_v57 = vpop.f32.mrb[95].mxu0 }
 0x1c4   : > { %v1692_v62 = vmax.f32 %v1569_v23, 0.0  ;;  %v1573_v32 = vadd.f32 %v3358_v28, %v1300_v4 }
 0x1c5   : > { %2030 = vst [vmem:[%s3028_s8 + $0x260] sm:$0xff] %v1691_v15  ;;  %v2093_v17 = vadd.f32 %v2092_v60, %v1691_v15  ;;  %v1693_v18 = vmax.f32 %v1571_v58, 0.0 }
 0x1c6   : > { %2031 = vst [vmem:[%s3028_s8 + $0x268] sm:$0xff] %v1692_v62  ;;  %v1694_v22 = vmax.f32 %v1573_v32, 0.0  ;;  %v1303_v10 = vpop.f32.mrb[80].mxu1 }
 0x1c7   : > { %2032 = vst [vmem:[%s3028_s8 + $0x270] sm:$0xff] %v1693_v18  ;;  %v2094_v3 = vadd.f32 %v2093_v17, %v1693_v18  ;;  %v1304_v20 = vadd.f32 %v1303_v10, %v3011_v9  ;;  %v1305_v26 = vpop.f32.mrb[81].mxu1 }
 0x1c8   : > { %2033 = vst [vmem:[%s3028_s8 + $0x278] sm:$0xff] %v1694_v22  ;;  %v1306_v12 = vadd.f32 %v1305_v26, %v3015_v11  ;;  %v1307_v25 = vpop.f32.mrb[82].mxu1 }
 0x1c9   : > { %v1577_v28 = vadd.f32 %v3368_v7, %v1304_v20  ;;  %v1308_v14 = vadd.f32 %v1307_v25, %v3011_v9  ;;  %v1309_v6 = vpop.f32.mrb[83].mxu1 }
 0x1ca   : > { %v1579_v46 = vadd.f32 %v3372_v44, %v1306_v12  ;;  %v1310_v33 = vadd.f32 %v1309_v6, %v3015_v11 }
 0x1cb   : > { %v1695_v24 = vmax.f32 %v1577_v28, 0.0  ;;  %v1581_v37 = vadd.f32 %v3375_v30, %v1308_v14 }
 0x1cc   : > { %v1696_v7 = vmax.f32 %v1579_v46, 0.0  ;;  %v1583_v54 = vadd.f32 %v3378_v50, %v1310_v33 }
 0x1cd   : > { %2034 = vst [vmem:[%s3028_s8 + $0x280] sm:$0xff] %v1695_v24  ;;  %v2095_v39 = vadd.f32 %v2094_v3, %v1695_v24  ;;  %v1697_v40 = vmax.f32 %v1581_v37, 0.0 }
 0x1ce   : > { %2035 = vst [vmem:[%s3028_s8 + $0x288] sm:$0xff] %v1696_v7  ;;  %v1698_v44 = vmax.f32 %v1583_v54, 0.0  ;;  %v1313_v27 = vpop.f32.mrb[84].mxu1 }
 0x1cf   : > { %2036 = vst [vmem:[%s3028_s8 + $0x290] sm:$0xff] %v1697_v40  ;;  %v2096_v31 = vadd.f32 %v2095_v39, %v1697_v40  ;;  %v1314_v43 = vadd.f32 %v1313_v27, %v3011_v9  ;;  %v1315_v49 = vpop.f32.mrb[85].mxu1  ;;  %v2055_v40 = vld [vmem:[%s3179_s11] sm:$0x1] }
 0x1d0   : > { %2037 = vst [vmem:[%s3028_s8 + $0x298] sm:$0xff] %v1698_v44  ;;  %v1316_v30 = vadd.f32 %v1315_v49, %v3015_v11  ;;  %v1317_v47 = vpop.f32.mrb[86].mxu1 }
 0x1d1   : > { %v1587_v50 = vadd.f32 %v3388_v21, %v1314_v43  ;;  %v1318_v36 = vadd.f32 %v1317_v47, %v3011_v9  ;;  %v1319_v34 = vpop.f32.mrb[87].mxu1 }
 0x1d2   : > { %v1589_v41 = vadd.f32 %v3392_v2, %v1316_v30  ;;  %v1320_v56 = vadd.f32 %v1319_v34, %v3015_v11 }
 0x1d3   : > { %v1699_v55 = vmax.f32 %v1587_v50, 0.0  ;;  %v1591_v13 = vadd.f32 %v3395_v51, %v1318_v36 }
 0x1d4   : > { %v1700_v45 = vmax.f32 %v1589_v41, 0.0  ;;  %v1593_v59 = vadd.f32 %v3398_v5, %v1320_v56 }
 0x1d5   : > { %2038 = vst [vmem:[%s3028_s8 + $0x2a0] sm:$0xff] %v1699_v55  ;;  %v2097_v60 = vadd.f32 %v2096_v31, %v1699_v55  ;;  %v1701_v8 = vmax.f32 %v1591_v13, 0.0 }
 0x1d6   : > { %2039 = vst [vmem:[%s3028_s8 + $0x2a8] sm:$0xff] %v1700_v45  ;;  %v1702_v63 = vmax.f32 %v1593_v59, 0.0  ;;  %v1323_v21 = vpop.f32.mrb[88].mxu1 }
 0x1d7   : > { %2040 = vst [vmem:[%s3028_s8 + $0x2b0] sm:$0xff] %v1701_v8  ;;  %v2098_v0 = vadd.f32 %v2097_v60, %v1701_v8  ;;  %v1324_v2 = vadd.f32 %v1323_v21, %v3011_v9  ;;  %v1325_v61 = vpop.f32.mrb[89].mxu1 }
 0x1d8   : > { %2041 = vst [vmem:[%s3028_s8 + $0x2b8] sm:$0xff] %v1702_v63  ;;  %v1326_v48 = vadd.f32 %v1325_v61, %v3015_v11  ;;  %v1327_v51 = vpop.f32.mrb[90].mxu1 }
 0x1d9   : > { %v1597_v5 = vadd.f32 %v3408_v42, %v1324_v2  ;;  %v1328_v53 = vadd.f32 %v1327_v51, %v3011_v9  ;;  %v1329_v1 = vpop.f32.mrb[91].mxu1 }
 0x1da   : > { %v1599_v23 = vadd.f32 %v3412_v29, %v1326_v48  ;;  %v1330_v4 = vadd.f32 %v1329_v1, %v3015_v11 }
 0x1db   : > { %v1703_v15 = vmax.f32 %v1597_v5, 0.0  ;;  %v1601_v58 = vadd.f32 %v3415_v16, %v1328_v53 }
 0x1dc   : > { %v1704_v62 = vmax.f32 %v1599_v23, 0.0  ;;  %v1603_v32 = vadd.f32 %v3418_v35, %v1330_v4 }
 0x1dd   : > { %2042 = vst [vmem:[%s3028_s8 + $0x2c0] sm:$0xff] %v1703_v15  ;;  %v2099_v17 = vadd.f32 %v2098_v0, %v1703_v15  ;;  %v1705_v18 = vmax.f32 %v1601_v58, 0.0 }
 0x1de   : > { %2043 = vst [vmem:[%s3028_s8 + $0x2c8] sm:$0xff] %v1704_v62  ;;  %v1706_v22 = vmax.f32 %v1603_v32, 0.0  ;;  %v1333_v42 = vpop.f32.mrb[92].mxu1 }
 0x1df   : > { %2044 = vst [vmem:[%s3028_s8 + $0x2d0] sm:$0xff] %v1705_v18  ;;  %v2100_v10 = vadd.f32 %v2099_v17, %v1705_v18  ;;  %v1334_v29 = vadd.f32 %v1333_v42, %v3011_v9  ;;  %v1335_v3 = vpop.f32.mrb[93].mxu1 }
 0x1e0   : > { %2045 = vst [vmem:[%s3028_s8 + $0x2d8] sm:$0xff] %v1706_v22  ;;  %v1336_v20 = vadd.f32 %v1335_v3, %v3015_v11  ;;  %v1337_v16 = vpop.f32.mrb[94].mxu1 }
 0x1e1   : > { %v1607_v35 = vadd.f32 %v3428_v19, %v1334_v29  ;;  %v1338_v26 = vadd.f32 %v1337_v16, %v3011_v9  ;;  %v1339_v12 = vpop.f32.mrb[95].mxu1 }
 0x1e2   : > { %v1609_v25 = vadd.f32 %v3432_v52, %v1336_v20  ;;  %v1340_v28 = vadd.f32 %v1339_v12, %v3015_v11 }
 0x1e3   : > { %v1707_v14 = vmax.f32 %v1607_v35, 0.0  ;;  %v1611_v6 = vadd.f32 %v3435_v38, %v1338_v26 }
 0x1e4   : > { %v1708_v46 = vmax.f32 %v1609_v25, 0.0  ;;  %v1613_v33 = vadd.f32 %v3438_v57, %v1340_v28 }
 0x1e5   : > { %2046 = vst [vmem:[%s3028_s8 + $0x2e0] sm:$0xff] %v1707_v14  ;;  %v2101_v24 = vadd.f32 %v2100_v10, %v1707_v14  ;;  %v1709_v37 = vmax.f32 %v1611_v6, 0.0 }
 0x1e6   : > { %2047 = vst [vmem:[%s3028_s8 + $0x2e8] sm:$0xff] %v1708_v46  ;;  %v1710_v19 = vmax.f32 %v1613_v33, 0.0 }
 0x1e7   : > { %2048 = vst [vmem:[%s3028_s8 + $0x2f0] sm:$0xff] %v1709_v37  ;;  %v2102_v9 = vadd.f32 %v2101_v24, %v1709_v37 }
 0x1e8   : > { %2049 = vst [vmem:[%s3028_s8 + $0x2f8] sm:$0xff] %v1710_v19 }
 0x1e9   : > { %v2103_v7 = vrot.slane %v2102_v9, 4 }
 0x1eb   : > { %v2104_v52 = vadd.f32 %v2103_v7, %v2102_v9 }
 0x1ed   : > { %v2105_v54 = vrot.slane %v2104_v52, 2 }
 0x1ef   : > { %v2106_v11 = vadd.f32 %v2105_v54, %v2104_v52 }
 0x1f1   : > { %v2107_v39 = vrot.slane %v2106_v11, 1 }
 0x1f3   : > { %v2108_v38 = vadd.f32 %v2107_v39, %v2106_v11 }
 0x1f5   : > { %v2109_v44 = vadd.f32 %v2108_v38, %v2055_v40 }
 0x1f7   : > { %2110 = vst [vmem:[%s3179_s11] sm:$0x1] %v2109_v44 }
 0x1f8 PF: > { %s15_s17 = sadd.s32 1, %s2798_s17   ;;  %s3496_s15 = smov %s2794_s16 }
 0x1f9   : > { %p12_p5 = scmp.ge.s32.totalorder %s15_s17, 4   ;;  %s3497_s16 = smov %s3499_s18 }
 0x1fb   :  { %14 = sbr.rel (!%p12_p5) target bundleno = 2 (0x2), region = 84 }

</bundles_post_ra>
